<compile_context>
chip_gen: v6e
topology: v6e:2x2x1
jax: 0.10.0
libtpu: 0.0.40
codegen_flags: <defaults>
</compile_context>

<pallas_src>
import functools

import jax
import jax.numpy as jnp
from jax.experimental import pallas as pl
from jax.experimental.pallas import tpu as pltpu

# ----------------------------- configuration ------------------------------
B = 2          # batch
S = 8          # sequence length
D = 32         # d_model
H = 4          # heads
F = 64         # ff_middle_dim (small stand-in for 2048)
EPS = 1e-6     # norm_eps
# dropout p=0.1 is identity at inference


def _decode_layer_kernel(x_ref, es_ref, ett_ref, mask_ref,
                         wqo_ref, wkv_ref, w1_ref, w2_ref,
                         dvec_ref, bkv_ref, b1_ref,
                         o_ref, ctx_ref, *, batch, seq, heads, eps):
    n, d_model = x_ref.shape
    dh = d_model // heads

    # weights / packed params loaded once; both attention calls and all three
    # LayerNorms share them, exactly as the torch module reuses its submodules.
    wq = wqo_ref[0]                      # 1/sqrt(dh) already folded in (wrapper)
    wo = wqo_ref[1]
    wkv = wkv_ref[...]                   # (D, 2D): [Wk | Wv]
    w1, w2 = w1_ref[...], w2_ref[...]
    dv = dvec_ref[...]                   # (5, D) rows: bq_s, bo, ln_a, ln_b, b2
    bq, bo = dv[0:1], dv[1:2]
    ln_a, ln_b = dv[2:3], dv[3:4]
    b2 = dv[4:5]
    bkv = bkv_ref[...]                   # (1, 2D)
    b1 = b1_ref[...]                     # (1, F)

    def layer_norm(t):                   # t: (n, D)
        mean = jnp.mean(t, axis=-1, keepdims=True)
        # unbiased variance (ddof=1) and eps added to std: matches torch .std() usage
        var = jnp.sum((t - mean) ** 2, axis=-1, keepdims=True) / (t.shape[-1] - 1)
        inv = pl.reciprocal(jnp.sqrt(var) + eps)      # reciprocal-multiply
        # TODO(synk): approx=True would route this to the idle EUP (v6e/v7x); kept
        # exact so the combined error with the approx softmax stays inside 2e-3.
        return ln_a * (t - mean) * inv + ln_b

    def mha(q_in, kv_in, bias):          # q_in/kv_in: (n, D); bias: (S, S) additive
        # fused projections over the whole flattened batch: 1 push for Q, 1 for K|V
        q2 = jnp.dot(q_in, wq, preferred_element_type=jnp.float32) + bq
        kv2 = jnp.dot(kv_in, wkv, preferred_element_type=jnp.float32) + bkv
        bias_b = jnp.broadcast_to(bias[None, :, :], (batch, seq, seq))   # hoisted once
        for h in range(heads):           # static; each head batched over B
            sl = slice(h * dh, (h + 1) * dh)
            qh = q2[:, sl].reshape(batch, seq, dh)
            kh = kv2[:, sl].reshape(batch, seq, dh)
            vh = kv2[:, d_model + h * dh:d_model + (h + 1) * dh].reshape(
                batch, seq, dh)
            s = jnp.einsum('bqd,bkd->bqk', qh, kh,
                           preferred_element_type=jnp.float32) + bias_b
            s = s - jnp.max(s, axis=-1, keepdims=True)
            p = jnp.exp(s)
            p = p * pl.reciprocal(jnp.sum(p, axis=-1, keepdims=True), approx=True)
            ctx = jnp.einsum('bqk,bkd->bqd', p, vh,
                             preferred_element_type=jnp.float32)
            ctx_ref[:, sl] = ctx.reshape(n, dh)       # collect heads in VMEM scratch
        # fold all heads with ONE full-Wo matmul (no per-head Wo pushes / adds)
        return jnp.dot(ctx_ref[...], wo, preferred_element_type=jnp.float32) + bo

    x = x_ref[...]

    # block 1: masked self-attention + residual + LayerNorm
    a = layer_norm(x + mha(x, x, mask_ref[0]))

    # block 2: cross-attention; src = e_spacial + e_temporal.transpose(-3,-2)
    src = es_ref[...] + ett_ref[...]
    b = layer_norm(a + mha(a, src, mask_ref[1]))

    # block 3: feed-forward + residual + LayerNorm
    h1 = jnp.maximum(jnp.dot(b, w1, preferred_element_type=jnp.float32) + b1, 0.0)
    ff = jnp.dot(h1, w2, preferred_element_type=jnp.float32) + b2
    o_ref[...] = layer_norm(b + ff)      # dense (n, D) store, no in-kernel reshape


def decode_layer(x, e_spacial, e_temporal, trg_mask, src_mask, params):
    """x/e_spacial: (B,S,D); e_temporal: (S,B,D); masks: (S,S) float {0,1}."""
    bsz, seq, d_model = x.shape
    n = bsz * seq
    dh = d_model // H
    scale = 1.0 / jnp.sqrt(jnp.float32(dh))

    # Wrapper-side layout plumbing + constant folds (free XLA work):
    #  * flatten activations to (B*S, D); transpose e_temporal (torch transpose(-3,-2))
    #  * additive mask biases (mask-1)*1e9 packed into one (2,S,S) slab
    #  * 1/sqrt(dh) folded into wq/bq; K|V weights fused; wq|wo stacked
    #  * all (1,D) row params packed into one (5,D) slab  -> 11 operands instead of 17
    x_flat = x.reshape(n, d_model)
    es_flat = e_spacial.reshape(n, d_model)
    ett_flat = jnp.swapaxes(e_temporal, -3, -2).reshape(n, d_model)
    mask_bias = jnp.stack([(trg_mask - 1.0) * 1e9, (src_mask - 1.0) * 1e9])

    wqo = jnp.stack([params["wq"] * scale, params["wo"]])                 # (2, D, D)
    wkv = jnp.concatenate([params["wk"], params["wv"]], axis=1)          # (D, 2D)
    bkv = jnp.concatenate([params["bk"], params["bv"]], axis=1)          # (1, 2D)
    dvecs = jnp.concatenate([params["bq"] * scale, params["bo"],
                             params["ln_a"], params["ln_b"], params["b2"]], axis=0)

    operands = (x_flat, es_flat, ett_flat, mask_bias, wqo, wkv,
                params["w1"], params["w2"], dvecs, bkv, params["b1"])

    def full(arr):
        nd = arr.ndim
        return pl.BlockSpec(arr.shape, lambda i, _nd=nd: (0,) * _nd)

    kernel = functools.partial(_decode_layer_kernel, batch=bsz, seq=seq,
                               heads=H, eps=EPS)
    out2d = pl.pallas_call(
        kernel,
        out_shape=jax.ShapeDtypeStruct((n, d_model), jnp.float32),
        grid_spec=pltpu.PrefetchScalarGridSpec(
            num_scalar_prefetch=0,
            grid=(1,),                   # single step: whole problem fits VMEM
            in_specs=[full(a) for a in operands],
            out_specs=pl.BlockSpec((n, d_model), lambda i: (0, 0)),
            scratch_shapes=[pltpu.VMEM((n, d_model), jnp.float32)],
        ),
        compiler_params=pltpu.CompilerParams(
            dimension_semantics=("arbitrary",),
            vmem_limit_bytes=32 * 1024 * 1024),
    )(*operands)
    return out2d.reshape(bsz, seq, d_model)


def init_params(key):
    ks = jax.random.split(key, 12)
    s = 0.1
    return {
        "wq": jax.random.normal(ks[0], (D, D), jnp.float32) * s,
        "bq": jax.random.normal(ks[1], (1, D), jnp.float32) * s,
        "wk": jax.random.normal(ks[2], (D, D), jnp.float32) * s,
        "bk": jax.random.normal(ks[3], (1, D), jnp.float32) * s,
        "wv": jax.random.normal(ks[4], (D, D), jnp.float32) * s,
        "bv": jax.random.normal(ks[5], (1, D), jnp.float32) * s,
        "wo": jax.random.normal(ks[6], (D, D), jnp.float32) * s,
        "bo": jax.random.normal(ks[7], (1, D), jnp.float32) * s,
        "ln_a": jnp.ones((1, D), jnp.float32),
        "ln_b": jnp.zeros((1, D), jnp.float32),
        "w1": jax.random.normal(ks[8], (D, F), jnp.float32) * s,
        "b1": jax.random.normal(ks[9], (1, F), jnp.float32) * s,
        "w2": jax.random.normal(ks[10], (F, D), jnp.float32) * s,
        "b2": jax.random.normal(ks[11], (1, D), jnp.float32) * s,
    }


# ----------------------- pure-JAX reference (checking) ---------------------
def _ref_forward(x, e_spacial, e_temporal, trg_mask, src_mask, p):
    dh = D // H

    def ln(t):
        mean = jnp.mean(t, axis=-1, keepdims=True)
        var = jnp.sum((t - mean) ** 2, axis=-1, keepdims=True) / (t.shape[-1] - 1)
        return p["ln_a"][0] * (t - mean) / (jnp.sqrt(var) + EPS) + p["ln_b"][0]

    def mha(q_in, kv_in, mask):
        q = q_in @ p["wq"] + p["bq"][0]
        k = kv_in @ p["wk"] + p["bk"][0]
        v = kv_in @ p["wv"] + p["bv"][0]
        bsz, sq, _ = q_in.shape
        sk = kv_in.shape[1]
        qh = q.reshape(bsz, sq, H, dh).transpose(0, 2, 1, 3)
        kh = k.reshape(bsz, sk, H, dh).transpose(0, 2, 1, 3)
        vh = v.reshape(bsz, sk, H, dh).transpose(0, 2, 1, 3)
        s = jnp.einsum("bhqd,bhkd->bhqk", qh, kh) / jnp.sqrt(jnp.float32(dh))
        s = jnp.where(mask[None, None] == 0.0, -1e9, s)
        pm = jax.nn.softmax(s, axis=-1)
        ctx = jnp.einsum("bhqk,bhkd->bhqd", pm, vh)
        ctx = ctx.transpose(0, 2, 1, 3).reshape(bsz, sq, D)
        return ctx @ p["wo"] + p["bo"][0]

    x1 = ln(x + mha(x, x, trg_mask))
    src = e_spacial + jnp.swapaxes(e_temporal, -3, -2)
    x2 = ln(x1 + mha(x1, src, src_mask))
    ff = jnp.maximum(x2 @ p["w1"] + p["b1"][0], 0.0) @ p["w2"] + p["b2"][0]
    return ln(x2 + ff)


if __name__ == "__main__":
    key = jax.random.PRNGKey(0)
    kx, kes, ket, kp = jax.random.split(key, 4)
    x = jax.random.normal(kx, (B, S, D), jnp.float32)
    e_spacial = jax.random.normal(kes, (B, S, D), jnp.float32)
    e_temporal = jax.random.normal(ket, (S, B, D), jnp.float32)   # pre-transpose layout
    trg_mask = jnp.tril(jnp.ones((S, S), jnp.float32))            # causal decoder mask
    src_mask = jnp.ones((S, S), jnp.float32)
    params = init_params(kp)

    out = decode_layer(x, e_spacial, e_temporal, trg_mask, src_mask, params)
    out = jax.block_until_ready(out)

    ref = _ref_forward(x, e_spacial, e_temporal, trg_mask, src_mask, params)
    assert out.shape == (B, S, D)
    err = jnp.max(jnp.abs(out - ref))
    assert jnp.allclose(out, ref, atol=2e-3, rtol=2e-3), f"max err {err}"
    print("KERNEL_OK")
</pallas_src>

<mosaic_0001>
module attributes {stable_mosaic.version = 11 : i64} {
  func.func @_decode_layer_kernel(%arg0: i32, %arg1: memref<16x32xf32, #tpu.memory_space<vmem>>, %arg2: memref<16x32xf32, #tpu.memory_space<vmem>>, %arg3: memref<16x32xf32, #tpu.memory_space<vmem>>, %arg4: memref<2x8x8xf32, #tpu.memory_space<vmem>>, %arg5: memref<2x32x32xf32, #tpu.memory_space<vmem>>, %arg6: memref<32x64xf32, #tpu.memory_space<vmem>>, %arg7: memref<32x64xf32, #tpu.memory_space<vmem>>, %arg8: memref<64x32xf32, #tpu.memory_space<vmem>>, %arg9: memref<5x32xf32, #tpu.memory_space<vmem>>, %arg10: memref<1x64xf32, #tpu.memory_space<vmem>>, %arg11: memref<1x64xf32, #tpu.memory_space<vmem>>, %arg12: memref<16x32xf32, #tpu.memory_space<vmem>>, %arg13: memref<16x32xf32, #tpu.memory_space<vmem>>) attributes {dimension_semantics = [#tpu.dimension_semantics<arbitrary>], iteration_bounds = array<i64: 1>, scalar_prefetch = 0 : i64, scratch_operands = 1 : i64, tpu.core_type = #tpu.core_type<tc>, window_params = [{pipeline_mode = #tpu.pipeline_mode<synchronous>, transform_indices = @transform_0, window_bounds = array<i64: 16, 32>}, {pipeline_mode = #tpu.pipeline_mode<synchronous>, transform_indices = @transform_1, window_bounds = array<i64: 16, 32>}, {pipeline_mode = #tpu.pipeline_mode<synchronous>, transform_indices = @transform_2, window_bounds = array<i64: 16, 32>}, {pipeline_mode = #tpu.pipeline_mode<synchronous>, transform_indices = @transform_3, window_bounds = array<i64: 2, 8, 8>}, {pipeline_mode = #tpu.pipeline_mode<synchronous>, transform_indices = @transform_4, window_bounds = array<i64: 2, 32, 32>}, {pipeline_mode = #tpu.pipeline_mode<synchronous>, transform_indices = @transform_5, window_bounds = array<i64: 32, 64>}, {pipeline_mode = #tpu.pipeline_mode<synchronous>, transform_indices = @transform_6, window_bounds = array<i64: 32, 64>}, {pipeline_mode = #tpu.pipeline_mode<synchronous>, transform_indices = @transform_7, window_bounds = array<i64: 64, 32>}, {pipeline_mode = #tpu.pipeline_mode<synchronous>, transform_indices = @transform_8, window_bounds = array<i64: 5, 32>}, {pipeline_mode = #tpu.pipeline_mode<synchronous>, transform_indices = @transform_9, window_bounds = array<i64: 1, 64>}, {pipeline_mode = #tpu.pipeline_mode<synchronous>, transform_indices = @transform_10, window_bounds = array<i64: 1, 64>}, {pipeline_mode = #tpu.pipeline_mode<synchronous>, transform_indices = @transform_11, window_bounds = array<i64: 16, 32>}]} {
    %c0 = arith.constant 0 : index
    %c0_0 = arith.constant 0 : index
    %c0_1 = arith.constant 0 : index
    %0 = vector.load %arg5[%c0, %c0_0, %c0_1] : memref<2x32x32xf32, #tpu.memory_space<vmem>>, vector<1x32x32xf32>
    %1 = vector.shape_cast %0 : vector<1x32x32xf32> to vector<32x32xf32>
    %c1 = arith.constant 1 : index
    %c0_2 = arith.constant 0 : index
    %c0_3 = arith.constant 0 : index
    %2 = vector.load %arg5[%c1, %c0_2, %c0_3] : memref<2x32x32xf32, #tpu.memory_space<vmem>>, vector<1x32x32xf32>
    %3 = vector.shape_cast %2 : vector<1x32x32xf32> to vector<32x32xf32>
    %c0_4 = arith.constant 0 : index
    %c0_5 = arith.constant 0 : index
    %4 = vector.load %arg6[%c0_4, %c0_5] : memref<32x64xf32, #tpu.memory_space<vmem>>, vector<32x64xf32>
    %c0_6 = arith.constant 0 : index
    %c0_7 = arith.constant 0 : index
    %5 = vector.load %arg7[%c0_6, %c0_7] : memref<32x64xf32, #tpu.memory_space<vmem>>, vector<32x64xf32>
    %c0_8 = arith.constant 0 : index
    %c0_9 = arith.constant 0 : index
    %6 = vector.load %arg8[%c0_8, %c0_9] : memref<64x32xf32, #tpu.memory_space<vmem>>, vector<64x32xf32>
    %c0_10 = arith.constant 0 : index
    %c0_11 = arith.constant 0 : index
    %7 = vector.load %arg9[%c0_10, %c0_11] : memref<5x32xf32, #tpu.memory_space<vmem>>, vector<5x32xf32>
    %8 = vector.extract_strided_slice %7 {offsets = [0, 0], sizes = [1, 32], strides = [1, 1]} : vector<5x32xf32> to vector<1x32xf32>
    %9 = vector.extract_strided_slice %7 {offsets = [1, 0], sizes = [1, 32], strides = [1, 1]} : vector<5x32xf32> to vector<1x32xf32>
    %10 = vector.extract_strided_slice %7 {offsets = [2, 0], sizes = [1, 32], strides = [1, 1]} : vector<5x32xf32> to vector<1x32xf32>
    %11 = vector.extract_strided_slice %7 {offsets = [3, 0], sizes = [1, 32], strides = [1, 1]} : vector<5x32xf32> to vector<1x32xf32>
    %12 = vector.extract_strided_slice %7 {offsets = [4, 0], sizes = [1, 32], strides = [1, 1]} : vector<5x32xf32> to vector<1x32xf32>
    %c0_12 = arith.constant 0 : index
    %c0_13 = arith.constant 0 : index
    %13 = vector.load %arg10[%c0_12, %c0_13] : memref<1x64xf32, #tpu.memory_space<vmem>>, vector<1x64xf32>
    %c0_14 = arith.constant 0 : index
    %c0_15 = arith.constant 0 : index
    %14 = vector.load %arg11[%c0_14, %c0_15] : memref<1x64xf32, #tpu.memory_space<vmem>>, vector<1x64xf32>
    %c0_16 = arith.constant 0 : index
    %c0_17 = arith.constant 0 : index
    %15 = vector.load %arg1[%c0_16, %c0_17] : memref<16x32xf32, #tpu.memory_space<vmem>>, vector<16x32xf32>
    %c0_18 = arith.constant 0 : index
    %c0_19 = arith.constant 0 : index
    %c0_20 = arith.constant 0 : index
    %16 = vector.load %arg4[%c0_18, %c0_19, %c0_20] : memref<2x8x8xf32, #tpu.memory_space<vmem>>, vector<1x8x8xf32>
    %17 = vector.shape_cast %16 : vector<1x8x8xf32> to vector<8x8xf32>
    %cst = arith.constant dense<0.000000e+00> : vector<16x32xf32>
    %18 = tpu.matmul %15, %1, %cst {dimension_numbers = #tpu.dot_dimension_numbers<[1], [0], [0], [1], [0, 0, 1, 1], [], []>} : vector<16x32xf32>, vector<32x32xf32>, vector<16x32xf32> -> vector<16x32xf32>
    %19 = vector.broadcast %8 : vector<1x32xf32> to vector<16x32xf32>
    %20 = arith.addf %18, %19 : vector<16x32xf32>
    %cst_21 = arith.constant dense<0.000000e+00> : vector<16x64xf32>
    %21 = tpu.matmul %15, %4, %cst_21 {dimension_numbers = #tpu.dot_dimension_numbers<[1], [0], [0], [1], [0, 0, 1, 1], [], []>} : vector<16x32xf32>, vector<32x64xf32>, vector<16x64xf32> -> vector<16x64xf32>
    %22 = vector.broadcast %13 : vector<1x64xf32> to vector<16x64xf32>
    %23 = arith.addf %21, %22 : vector<16x64xf32>
    %24 = vector.shape_cast %17 : vector<8x8xf32> to vector<1x8x8xf32>
    %25 = vector.shape_cast %24 : vector<1x8x8xf32> to vector<1x8x8xf32>
    %26 = vector.broadcast %25 : vector<1x8x8xf32> to vector<2x8x8xf32>
    %27 = vector.extract_strided_slice %20 {offsets = [0, 0], sizes = [16, 8], strides = [1, 1]} : vector<16x32xf32> to vector<16x8xf32>
    %28 = vector.shape_cast %27 : vector<16x8xf32> to vector<2x8x8xf32>
    %29 = vector.extract_strided_slice %23 {offsets = [0, 0], sizes = [16, 8], strides = [1, 1]} : vector<16x64xf32> to vector<16x8xf32>
    %30 = vector.shape_cast %29 : vector<16x8xf32> to vector<2x8x8xf32>
    %31 = vector.extract_strided_slice %23 {offsets = [0, 32], sizes = [16, 8], strides = [1, 1]} : vector<16x64xf32> to vector<16x8xf32>
    %32 = vector.shape_cast %31 : vector<16x8xf32> to vector<2x8x8xf32>
    "tpu.trace_start"() <{level = 10 : i32, message = "bqd,bkd->bqk"}> : () -> ()
    %cst_22 = arith.constant dense<0.000000e+00> : vector<2x8x8xf32>
    %33 = tpu.matmul %28, %30, %cst_22 {dimension_numbers = #tpu.dot_dimension_numbers<[2], [2], [1], [1], [0, 0, 0, 1, 1, 1], [0], [0]>} : vector<2x8x8xf32>, vector<2x8x8xf32>, vector<2x8x8xf32> -> vector<2x8x8xf32>
    "tpu.trace_stop"() : () -> ()
    %34 = arith.addf %33, %26 : vector<2x8x8xf32>
    %cst_23 = arith.constant dense<0xFF800000> : vector<2x8xf32>
    %35 = vector.multi_reduction <maximumf>, %34, %cst_23 [2] : vector<2x8x8xf32> to vector<2x8xf32>
    %36 = vector.shape_cast %35 : vector<2x8xf32> to vector<2x8x1xf32>
    %37 = vector.broadcast %36 : vector<2x8x1xf32> to vector<2x8x8xf32>
    %38 = arith.subf %34, %37 : vector<2x8x8xf32>
    %39 = math.exp %38 : vector<2x8x8xf32>
    %cst_24 = arith.constant dense<0.000000e+00> : vector<2x8xf32>
    %40 = vector.multi_reduction <add>, %39, %cst_24 [2] : vector<2x8x8xf32> to vector<2x8xf32>
    %41 = vector.shape_cast %40 : vector<2x8xf32> to vector<2x8x1xf32>
    %42 = tpu.reciprocal %41 {approx = true} : vector<2x8x1xf32> -> vector<2x8x1xf32>
    %43 = vector.broadcast %42 : vector<2x8x1xf32> to vector<2x8x8xf32>
    %44 = arith.mulf %39, %43 : vector<2x8x8xf32>
    "tpu.trace_start"() <{level = 10 : i32, message = "bqk,bkd->bqd"}> : () -> ()
    %cst_25 = arith.constant dense<0.000000e+00> : vector<2x8x8xf32>
    %45 = tpu.matmul %44, %32, %cst_25 {dimension_numbers = #tpu.dot_dimension_numbers<[2], [1], [1], [2], [0, 0, 0, 1, 1, 2], [0], [0]>} : vector<2x8x8xf32>, vector<2x8x8xf32>, vector<2x8x8xf32> -> vector<2x8x8xf32>
    "tpu.trace_stop"() : () -> ()
    %46 = vector.shape_cast %45 : vector<2x8x8xf32> to vector<16x8xf32>
    %c0_26 = arith.constant 0 : index
    %c0_27 = arith.constant 0 : index
    %47 = vector.load %arg13[%c0_26, %c0_27] : memref<16x32xf32, #tpu.memory_space<vmem>>, vector<16x8xf32>
    tpu.vector_store %arg13[%c0_26, %c0_27], %46 {strides = array<i32>} : memref<16x32xf32, #tpu.memory_space<vmem>>, vector<16x8xf32>,
    %48 = vector.extract_strided_slice %20 {offsets = [0, 8], sizes = [16, 8], strides = [1, 1]} : vector<16x32xf32> to vector<16x8xf32>
    %49 = vector.shape_cast %48 : vector<16x8xf32> to vector<2x8x8xf32>
    %50 = vector.extract_strided_slice %23 {offsets = [0, 8], sizes = [16, 8], strides = [1, 1]} : vector<16x64xf32> to vector<16x8xf32>
    %51 = vector.shape_cast %50 : vector<16x8xf32> to vector<2x8x8xf32>
    %52 = vector.extract_strided_slice %23 {offsets = [0, 40], sizes = [16, 8], strides = [1, 1]} : vector<16x64xf32> to vector<16x8xf32>
    %53 = vector.shape_cast %52 : vector<16x8xf32> to vector<2x8x8xf32>
    "tpu.trace_start"() <{level = 10 : i32, message = "bqd,bkd->bqk"}> : () -> ()
    %cst_28 = arith.constant dense<0.000000e+00> : vector<2x8x8xf32>
    %54 = tpu.matmul %49, %51, %cst_28 {dimension_numbers = #tpu.dot_dimension_numbers<[2], [2], [1], [1], [0, 0, 0, 1, 1, 1], [0], [0]>} : vector<2x8x8xf32>, vector<2x8x8xf32>, vector<2x8x8xf32> -> vector<2x8x8xf32>
    "tpu.trace_stop"() : () -> ()
    %55 = arith.addf %54, %26 : vector<2x8x8xf32>
    %cst_29 = arith.constant dense<0xFF800000> : vector<2x8xf32>
    %56 = vector.multi_reduction <maximumf>, %55, %cst_29 [2] : vector<2x8x8xf32> to vector<2x8xf32>
    %57 = vector.shape_cast %56 : vector<2x8xf32> to vector<2x8x1xf32>
    %58 = vector.broadcast %57 : vector<2x8x1xf32> to vector<2x8x8xf32>
    %59 = arith.subf %55, %58 : vector<2x8x8xf32>
    %60 = math.exp %59 : vector<2x8x8xf32>
    %cst_30 = arith.constant dense<0.000000e+00> : vector<2x8xf32>
    %61 = vector.multi_reduction <add>, %60, %cst_30 [2] : vector<2x8x8xf32> to vector<2x8xf32>
    %62 = vector.shape_cast %61 : vector<2x8xf32> to vector<2x8x1xf32>
    %63 = tpu.reciprocal %62 {approx = true} : vector<2x8x1xf32> -> vector<2x8x1xf32>
    %64 = vector.broadcast %63 : vector<2x8x1xf32> to vector<2x8x8xf32>
    %65 = arith.mulf %60, %64 : vector<2x8x8xf32>
    "tpu.trace_start"() <{level = 10 : i32, message = "bqk,bkd->bqd"}> : () -> ()
    %cst_31 = arith.constant dense<0.000000e+00> : vector<2x8x8xf32>
    %66 = tpu.matmul %65, %53, %cst_31 {dimension_numbers = #tpu.dot_dimension_numbers<[2], [1], [1], [2], [0, 0, 0, 1, 1, 2], [0], [0]>} : vector<2x8x8xf32>, vector<2x8x8xf32>, vector<2x8x8xf32> -> vector<2x8x8xf32>
    "tpu.trace_stop"() : () -> ()
    %67 = vector.shape_cast %66 : vector<2x8x8xf32> to vector<16x8xf32>
    %c0_32 = arith.constant 0 : index
    %c8 = arith.constant 8 : index
    %68 = vector.load %arg13[%c0_32, %c8] : memref<16x32xf32, #tpu.memory_space<vmem>>, vector<16x8xf32>
    tpu.vector_store %arg13[%c0_32, %c8], %67 {strides = array<i32>} : memref<16x32xf32, #tpu.memory_space<vmem>>, vector<16x8xf32>,
    %69 = vector.extract_strided_slice %20 {offsets = [0, 16], sizes = [16, 8], strides = [1, 1]} : vector<16x32xf32> to vector<16x8xf32>
    %70 = vector.shape_cast %69 : vector<16x8xf32> to vector<2x8x8xf32>
    %71 = vector.extract_strided_slice %23 {offsets = [0, 16], sizes = [16, 8], strides = [1, 1]} : vector<16x64xf32> to vector<16x8xf32>
    %72 = vector.shape_cast %71 : vector<16x8xf32> to vector<2x8x8xf32>
    %73 = vector.extract_strided_slice %23 {offsets = [0, 48], sizes = [16, 8], strides = [1, 1]} : vector<16x64xf32> to vector<16x8xf32>
    %74 = vector.shape_cast %73 : vector<16x8xf32> to vector<2x8x8xf32>
    "tpu.trace_start"() <{level = 10 : i32, message = "bqd,bkd->bqk"}> : () -> ()
    %cst_33 = arith.constant dense<0.000000e+00> : vector<2x8x8xf32>
    %75 = tpu.matmul %70, %72, %cst_33 {dimension_numbers = #tpu.dot_dimension_numbers<[2], [2], [1], [1], [0, 0, 0, 1, 1, 1], [0], [0]>} : vector<2x8x8xf32>, vector<2x8x8xf32>, vector<2x8x8xf32> -> vector<2x8x8xf32>
    "tpu.trace_stop"() : () -> ()
    %76 = arith.addf %75, %26 : vector<2x8x8xf32>
    %cst_34 = arith.constant dense<0xFF800000> : vector<2x8xf32>
    %77 = vector.multi_reduction <maximumf>, %76, %cst_34 [2] : vector<2x8x8xf32> to vector<2x8xf32>
    %78 = vector.shape_cast %77 : vector<2x8xf32> to vector<2x8x1xf32>
    %79 = vector.broadcast %78 : vector<2x8x1xf32> to vector<2x8x8xf32>
    %80 = arith.subf %76, %79 : vector<2x8x8xf32>
    %81 = math.exp %80 : vector<2x8x8xf32>
    %cst_35 = arith.constant dense<0.000000e+00> : vector<2x8xf32>
    %82 = vector.multi_reduction <add>, %81, %cst_35 [2] : vector<2x8x8xf32> to vector<2x8xf32>
    %83 = vector.shape_cast %82 : vector<2x8xf32> to vector<2x8x1xf32>
    %84 = tpu.reciprocal %83 {approx = true} : vector<2x8x1xf32> -> vector<2x8x1xf32>
    %85 = vector.broadcast %84 : vector<2x8x1xf32> to vector<2x8x8xf32>
    %86 = arith.mulf %81, %85 : vector<2x8x8xf32>
    "tpu.trace_start"() <{level = 10 : i32, message = "bqk,bkd->bqd"}> : () -> ()
    %cst_36 = arith.constant dense<0.000000e+00> : vector<2x8x8xf32>
    %87 = tpu.matmul %86, %74, %cst_36 {dimension_numbers = #tpu.dot_dimension_numbers<[2], [1], [1], [2], [0, 0, 0, 1, 1, 2], [0], [0]>} : vector<2x8x8xf32>, vector<2x8x8xf32>, vector<2x8x8xf32> -> vector<2x8x8xf32>
    "tpu.trace_stop"() : () -> ()
    %88 = vector.shape_cast %87 : vector<2x8x8xf32> to vector<16x8xf32>
    %c0_37 = arith.constant 0 : index
    %c16 = arith.constant 16 : index
    %89 = vector.load %arg13[%c0_37, %c16] : memref<16x32xf32, #tpu.memory_space<vmem>>, vector<16x8xf32>
    tpu.vector_store %arg13[%c0_37, %c16], %88 {strides = array<i32>} : memref<16x32xf32, #tpu.memory_space<vmem>>, vector<16x8xf32>,
    %90 = vector.extract_strided_slice %20 {offsets = [0, 24], sizes = [16, 8], strides = [1, 1]} : vector<16x32xf32> to vector<16x8xf32>
    %91 = vector.shape_cast %90 : vector<16x8xf32> to vector<2x8x8xf32>
    %92 = vector.extract_strided_slice %23 {offsets = [0, 24], sizes = [16, 8], strides = [1, 1]} : vector<16x64xf32> to vector<16x8xf32>
    %93 = vector.shape_cast %92 : vector<16x8xf32> to vector<2x8x8xf32>
    %94 = vector.extract_strided_slice %23 {offsets = [0, 56], sizes = [16, 8], strides = [1, 1]} : vector<16x64xf32> to vector<16x8xf32>
    %95 = vector.shape_cast %94 : vector<16x8xf32> to vector<2x8x8xf32>
    "tpu.trace_start"() <{level = 10 : i32, message = "bqd,bkd->bqk"}> : () -> ()
    %cst_38 = arith.constant dense<0.000000e+00> : vector<2x8x8xf32>
    %96 = tpu.matmul %91, %93, %cst_38 {dimension_numbers = #tpu.dot_dimension_numbers<[2], [2], [1], [1], [0, 0, 0, 1, 1, 1], [0], [0]>} : vector<2x8x8xf32>, vector<2x8x8xf32>, vector<2x8x8xf32> -> vector<2x8x8xf32>
    "tpu.trace_stop"() : () -> ()
    %97 = arith.addf %96, %26 : vector<2x8x8xf32>
    %cst_39 = arith.constant dense<0xFF800000> : vector<2x8xf32>
    %98 = vector.multi_reduction <maximumf>, %97, %cst_39 [2] : vector<2x8x8xf32> to vector<2x8xf32>
    %99 = vector.shape_cast %98 : vector<2x8xf32> to vector<2x8x1xf32>
    %100 = vector.broadcast %99 : vector<2x8x1xf32> to vector<2x8x8xf32>
    %101 = arith.subf %97, %100 : vector<2x8x8xf32>
    %102 = math.exp %101 : vector<2x8x8xf32>
    %cst_40 = arith.constant dense<0.000000e+00> : vector<2x8xf32>
    %103 = vector.multi_reduction <add>, %102, %cst_40 [2] : vector<2x8x8xf32> to vector<2x8xf32>
    %104 = vector.shape_cast %103 : vector<2x8xf32> to vector<2x8x1xf32>
    %105 = tpu.reciprocal %104 {approx = true} : vector<2x8x1xf32> -> vector<2x8x1xf32>
    %106 = vector.broadcast %105 : vector<2x8x1xf32> to vector<2x8x8xf32>
    %107 = arith.mulf %102, %106 : vector<2x8x8xf32>
    "tpu.trace_start"() <{level = 10 : i32, message = "bqk,bkd->bqd"}> : () -> ()
    %cst_41 = arith.constant dense<0.000000e+00> : vector<2x8x8xf32>
    %108 = tpu.matmul %107, %95, %cst_41 {dimension_numbers = #tpu.dot_dimension_numbers<[2], [1], [1], [2], [0, 0, 0, 1, 1, 2], [0], [0]>} : vector<2x8x8xf32>, vector<2x8x8xf32>, vector<2x8x8xf32> -> vector<2x8x8xf32>
    "tpu.trace_stop"() : () -> ()
    %109 = vector.shape_cast %108 : vector<2x8x8xf32> to vector<16x8xf32>
    %c0_42 = arith.constant 0 : index
    %c24 = arith.constant 24 : index
    %110 = vector.load %arg13[%c0_42, %c24] : memref<16x32xf32, #tpu.memory_space<vmem>>, vector<16x8xf32>
    tpu.vector_store %arg13[%c0_42, %c24], %109 {strides = array<i32>} : memref<16x32xf32, #tpu.memory_space<vmem>>, vector<16x8xf32>,
    %c0_43 = arith.constant 0 : index
    %c0_44 = arith.constant 0 : index
    %111 = vector.load %arg13[%c0_43, %c0_44] : memref<16x32xf32, #tpu.memory_space<vmem>>, vector<16x32xf32>
    %cst_45 = arith.constant dense<0.000000e+00> : vector<16x32xf32>
    %112 = tpu.matmul %111, %3, %cst_45 {dimension_numbers = #tpu.dot_dimension_numbers<[1], [0], [0], [1], [0, 0, 1, 1], [], []>} : vector<16x32xf32>, vector<32x32xf32>, vector<16x32xf32> -> vector<16x32xf32>
    %113 = vector.broadcast %9 : vector<1x32xf32> to vector<16x32xf32>
    %114 = arith.addf %112, %113 : vector<16x32xf32>
    %115 = arith.addf %15, %114 : vector<16x32xf32>
    %cst_46 = arith.constant dense<0.000000e+00> : vector<16xf32>
    %116 = vector.multi_reduction <add>, %115, %cst_46 [1] : vector<16x32xf32> to vector<16xf32>
    %117 = vector.shape_cast %116 : vector<16xf32> to vector<16x1xf32>
    %cst_47 = arith.constant 3.200000e+01 : f32
    %118 = vector.broadcast %cst_47 : f32 to vector<16x1xf32>
    %119 = arith.divf %117, %118 : vector<16x1xf32>
    %120 = vector.broadcast %119 : vector<16x1xf32> to vector<16x32xf32>
    %121 = arith.subf %115, %120 : vector<16x32xf32>
    %122 = arith.mulf %121, %121 : vector<16x32xf32>
    %cst_48 = arith.constant dense<0.000000e+00> : vector<16xf32>
    %123 = vector.multi_reduction <add>, %122, %cst_48 [1] : vector<16x32xf32> to vector<16xf32>
    %124 = vector.shape_cast %123 : vector<16xf32> to vector<16x1xf32>
    %cst_49 = arith.constant 3.100000e+01 : f32
    %125 = vector.broadcast %cst_49 : f32 to vector<16x1xf32>
    %126 = arith.divf %124, %125 : vector<16x1xf32>
    %127 = math.sqrt %126 : vector<16x1xf32>
    %cst_50 = arith.constant 9.99999997E-7 : f32
    %128 = vector.broadcast %cst_50 : f32 to vector<16x1xf32>
    %129 = arith.addf %127, %128 : vector<16x1xf32>
    %130 = tpu.reciprocal %129 : vector<16x1xf32> -> vector<16x1xf32>
    %131 = vector.broadcast %119 : vector<16x1xf32> to vector<16x32xf32>
    %132 = arith.subf %115, %131 : vector<16x32xf32>
    %133 = vector.broadcast %10 : vector<1x32xf32> to vector<16x32xf32>
    %134 = arith.mulf %133, %132 : vector<16x32xf32>
    %135 = vector.broadcast %130 : vector<16x1xf32> to vector<16x32xf32>
    %136 = arith.mulf %134, %135 : vector<16x32xf32>
    %137 = vector.broadcast %11 : vector<1x32xf32> to vector<16x32xf32>
    %138 = arith.addf %136, %137 : vector<16x32xf32>
    %c0_51 = arith.constant 0 : index
    %c0_52 = arith.constant 0 : index
    %139 = vector.load %arg2[%c0_51, %c0_52] : memref<16x32xf32, #tpu.memory_space<vmem>>, vector<16x32xf32>
    %c0_53 = arith.constant 0 : index
    %c0_54 = arith.constant 0 : index
    %140 = vector.load %arg3[%c0_53, %c0_54] : memref<16x32xf32, #tpu.memory_space<vmem>>, vector<16x32xf32>
    %141 = arith.addf %139, %140 : vector<16x32xf32>
    %c1_55 = arith.constant 1 : index
    %c0_56 = arith.constant 0 : index
    %c0_57 = arith.constant 0 : index
    %142 = vector.load %arg4[%c1_55, %c0_56, %c0_57] : memref<2x8x8xf32, #tpu.memory_space<vmem>>, vector<1x8x8xf32>
    %143 = vector.shape_cast %142 : vector<1x8x8xf32> to vector<8x8xf32>
    %cst_58 = arith.constant dense<0.000000e+00> : vector<16x32xf32>
    %144 = tpu.matmul %138, %1, %cst_58 {dimension_numbers = #tpu.dot_dimension_numbers<[1], [0], [0], [1], [0, 0, 1, 1], [], []>} : vector<16x32xf32>, vector<32x32xf32>, vector<16x32xf32> -> vector<16x32xf32>
    %145 = vector.broadcast %8 : vector<1x32xf32> to vector<16x32xf32>
    %146 = arith.addf %144, %145 : vector<16x32xf32>
    %cst_59 = arith.constant dense<0.000000e+00> : vector<16x64xf32>
    %147 = tpu.matmul %141, %4, %cst_59 {dimension_numbers = #tpu.dot_dimension_numbers<[1], [0], [0], [1], [0, 0, 1, 1], [], []>} : vector<16x32xf32>, vector<32x64xf32>, vector<16x64xf32> -> vector<16x64xf32>
    %148 = vector.broadcast %13 : vector<1x64xf32> to vector<16x64xf32>
    %149 = arith.addf %147, %148 : vector<16x64xf32>
    %150 = vector.shape_cast %143 : vector<8x8xf32> to vector<1x8x8xf32>
    %151 = vector.shape_cast %150 : vector<1x8x8xf32> to vector<1x8x8xf32>
    %152 = vector.broadcast %151 : vector<1x8x8xf32> to vector<2x8x8xf32>
    %153 = vector.extract_strided_slice %146 {offsets = [0, 0], sizes = [16, 8], strides = [1, 1]} : vector<16x32xf32> to vector<16x8xf32>
    %154 = vector.shape_cast %153 : vector<16x8xf32> to vector<2x8x8xf32>
    %155 = vector.extract_strided_slice %149 {offsets = [0, 0], sizes = [16, 8], strides = [1, 1]} : vector<16x64xf32> to vector<16x8xf32>
    %156 = vector.shape_cast %155 : vector<16x8xf32> to vector<2x8x8xf32>
    %157 = vector.extract_strided_slice %149 {offsets = [0, 32], sizes = [16, 8], strides = [1, 1]} : vector<16x64xf32> to vector<16x8xf32>
    %158 = vector.shape_cast %157 : vector<16x8xf32> to vector<2x8x8xf32>
    "tpu.trace_start"() <{level = 10 : i32, message = "bqd,bkd->bqk"}> : () -> ()
    %cst_60 = arith.constant dense<0.000000e+00> : vector<2x8x8xf32>
    %159 = tpu.matmul %154, %156, %cst_60 {dimension_numbers = #tpu.dot_dimension_numbers<[2], [2], [1], [1], [0, 0, 0, 1, 1, 1], [0], [0]>} : vector<2x8x8xf32>, vector<2x8x8xf32>, vector<2x8x8xf32> -> vector<2x8x8xf32>
    "tpu.trace_stop"() : () -> ()
    %160 = arith.addf %159, %152 : vector<2x8x8xf32>
    %cst_61 = arith.constant dense<0xFF800000> : vector<2x8xf32>
    %161 = vector.multi_reduction <maximumf>, %160, %cst_61 [2] : vector<2x8x8xf32> to vector<2x8xf32>
    %162 = vector.shape_cast %161 : vector<2x8xf32> to vector<2x8x1xf32>
    %163 = vector.broadcast %162 : vector<2x8x1xf32> to vector<2x8x8xf32>
    %164 = arith.subf %160, %163 : vector<2x8x8xf32>
    %165 = math.exp %164 : vector<2x8x8xf32>
    %cst_62 = arith.constant dense<0.000000e+00> : vector<2x8xf32>
    %166 = vector.multi_reduction <add>, %165, %cst_62 [2] : vector<2x8x8xf32> to vector<2x8xf32>
    %167 = vector.shape_cast %166 : vector<2x8xf32> to vector<2x8x1xf32>
    %168 = tpu.reciprocal %167 {approx = true} : vector<2x8x1xf32> -> vector<2x8x1xf32>
    %169 = vector.broadcast %168 : vector<2x8x1xf32> to vector<2x8x8xf32>
    %170 = arith.mulf %165, %169 : vector<2x8x8xf32>
    "tpu.trace_start"() <{level = 10 : i32, message = "bqk,bkd->bqd"}> : () -> ()
    %cst_63 = arith.constant dense<0.000000e+00> : vector<2x8x8xf32>
    %171 = tpu.matmul %170, %158, %cst_63 {dimension_numbers = #tpu.dot_dimension_numbers<[2], [1], [1], [2], [0, 0, 0, 1, 1, 2], [0], [0]>} : vector<2x8x8xf32>, vector<2x8x8xf32>, vector<2x8x8xf32> -> vector<2x8x8xf32>
    "tpu.trace_stop"() : () -> ()
    %172 = vector.shape_cast %171 : vector<2x8x8xf32> to vector<16x8xf32>
    %c0_64 = arith.constant 0 : index
    %c0_65 = arith.constant 0 : index
    %173 = vector.load %arg13[%c0_64, %c0_65] : memref<16x32xf32, #tpu.memory_space<vmem>>, vector<16x8xf32>
    tpu.vector_store %arg13[%c0_64, %c0_65], %172 {strides = array<i32>} : memref<16x32xf32, #tpu.memory_space<vmem>>, vector<16x8xf32>,
    %174 = vector.extract_strided_slice %146 {offsets = [0, 8], sizes = [16, 8], strides = [1, 1]} : vector<16x32xf32> to vector<16x8xf32>
    %175 = vector.shape_cast %174 : vector<16x8xf32> to vector<2x8x8xf32>
    %176 = vector.extract_strided_slice %149 {offsets = [0, 8], sizes = [16, 8], strides = [1, 1]} : vector<16x64xf32> to vector<16x8xf32>
    %177 = vector.shape_cast %176 : vector<16x8xf32> to vector<2x8x8xf32>
    %178 = vector.extract_strided_slice %149 {offsets = [0, 40], sizes = [16, 8], strides = [1, 1]} : vector<16x64xf32> to vector<16x8xf32>
    %179 = vector.shape_cast %178 : vector<16x8xf32> to vector<2x8x8xf32>
    "tpu.trace_start"() <{level = 10 : i32, message = "bqd,bkd->bqk"}> : () -> ()
    %cst_66 = arith.constant dense<0.000000e+00> : vector<2x8x8xf32>
    %180 = tpu.matmul %175, %177, %cst_66 {dimension_numbers = #tpu.dot_dimension_numbers<[2], [2], [1], [1], [0, 0, 0, 1, 1, 1], [0], [0]>} : vector<2x8x8xf32>, vector<2x8x8xf32>, vector<2x8x8xf32> -> vector<2x8x8xf32>
    "tpu.trace_stop"() : () -> ()
    %181 = arith.addf %180, %152 : vector<2x8x8xf32>
    %cst_67 = arith.constant dense<0xFF800000> : vector<2x8xf32>
    %182 = vector.multi_reduction <maximumf>, %181, %cst_67 [2] : vector<2x8x8xf32> to vector<2x8xf32>
    %183 = vector.shape_cast %182 : vector<2x8xf32> to vector<2x8x1xf32>
    %184 = vector.broadcast %183 : vector<2x8x1xf32> to vector<2x8x8xf32>
    %185 = arith.subf %181, %184 : vector<2x8x8xf32>
    %186 = math.exp %185 : vector<2x8x8xf32>
    %cst_68 = arith.constant dense<0.000000e+00> : vector<2x8xf32>
    %187 = vector.multi_reduction <add>, %186, %cst_68 [2] : vector<2x8x8xf32> to vector<2x8xf32>
    %188 = vector.shape_cast %187 : vector<2x8xf32> to vector<2x8x1xf32>
    %189 = tpu.reciprocal %188 {approx = true} : vector<2x8x1xf32> -> vector<2x8x1xf32>
    %190 = vector.broadcast %189 : vector<2x8x1xf32> to vector<2x8x8xf32>
    %191 = arith.mulf %186, %190 : vector<2x8x8xf32>
    "tpu.trace_start"() <{level = 10 : i32, message = "bqk,bkd->bqd"}> : () -> ()
    %cst_69 = arith.constant dense<0.000000e+00> : vector<2x8x8xf32>
    %192 = tpu.matmul %191, %179, %cst_69 {dimension_numbers = #tpu.dot_dimension_numbers<[2], [1], [1], [2], [0, 0, 0, 1, 1, 2], [0], [0]>} : vector<2x8x8xf32>, vector<2x8x8xf32>, vector<2x8x8xf32> -> vector<2x8x8xf32>
    "tpu.trace_stop"() : () -> ()
    %193 = vector.shape_cast %192 : vector<2x8x8xf32> to vector<16x8xf32>
    %c0_70 = arith.constant 0 : index
    %c8_71 = arith.constant 8 : index
    %194 = vector.load %arg13[%c0_70, %c8_71] : memref<16x32xf32, #tpu.memory_space<vmem>>, vector<16x8xf32>
    tpu.vector_store %arg13[%c0_70, %c8_71], %193 {strides = array<i32>} : memref<16x32xf32, #tpu.memory_space<vmem>>, vector<16x8xf32>,
    %195 = vector.extract_strided_slice %146 {offsets = [0, 16], sizes = [16, 8], strides = [1, 1]} : vector<16x32xf32> to vector<16x8xf32>
    %196 = vector.shape_cast %195 : vector<16x8xf32> to vector<2x8x8xf32>
    %197 = vector.extract_strided_slice %149 {offsets = [0, 16], sizes = [16, 8], strides = [1, 1]} : vector<16x64xf32> to vector<16x8xf32>
    %198 = vector.shape_cast %197 : vector<16x8xf32> to vector<2x8x8xf32>
    %199 = vector.extract_strided_slice %149 {offsets = [0, 48], sizes = [16, 8], strides = [1, 1]} : vector<16x64xf32> to vector<16x8xf32>
    %200 = vector.shape_cast %199 : vector<16x8xf32> to vector<2x8x8xf32>
    "tpu.trace_start"() <{level = 10 : i32, message = "bqd,bkd->bqk"}> : () -> ()
    %cst_72 = arith.constant dense<0.000000e+00> : vector<2x8x8xf32>
    %201 = tpu.matmul %196, %198, %cst_72 {dimension_numbers = #tpu.dot_dimension_numbers<[2], [2], [1], [1], [0, 0, 0, 1, 1, 1], [0], [0]>} : vector<2x8x8xf32>, vector<2x8x8xf32>, vector<2x8x8xf32> -> vector<2x8x8xf32>
    "tpu.trace_stop"() : () -> ()
    %202 = arith.addf %201, %152 : vector<2x8x8xf32>
    %cst_73 = arith.constant dense<0xFF800000> : vector<2x8xf32>
    %203 = vector.multi_reduction <maximumf>, %202, %cst_73 [2] : vector<2x8x8xf32> to vector<2x8xf32>
    %204 = vector.shape_cast %203 : vector<2x8xf32> to vector<2x8x1xf32>
    %205 = vector.broadcast %204 : vector<2x8x1xf32> to vector<2x8x8xf32>
    %206 = arith.subf %202, %205 : vector<2x8x8xf32>
    %207 = math.exp %206 : vector<2x8x8xf32>
    %cst_74 = arith.constant dense<0.000000e+00> : vector<2x8xf32>
    %208 = vector.multi_reduction <add>, %207, %cst_74 [2] : vector<2x8x8xf32> to vector<2x8xf32>
    %209 = vector.shape_cast %208 : vector<2x8xf32> to vector<2x8x1xf32>
    %210 = tpu.reciprocal %209 {approx = true} : vector<2x8x1xf32> -> vector<2x8x1xf32>
    %211 = vector.broadcast %210 : vector<2x8x1xf32> to vector<2x8x8xf32>
    %212 = arith.mulf %207, %211 : vector<2x8x8xf32>
    "tpu.trace_start"() <{level = 10 : i32, message = "bqk,bkd->bqd"}> : () -> ()
    %cst_75 = arith.constant dense<0.000000e+00> : vector<2x8x8xf32>
    %213 = tpu.matmul %212, %200, %cst_75 {dimension_numbers = #tpu.dot_dimension_numbers<[2], [1], [1], [2], [0, 0, 0, 1, 1, 2], [0], [0]>} : vector<2x8x8xf32>, vector<2x8x8xf32>, vector<2x8x8xf32> -> vector<2x8x8xf32>
    "tpu.trace_stop"() : () -> ()
    %214 = vector.shape_cast %213 : vector<2x8x8xf32> to vector<16x8xf32>
    %c0_76 = arith.constant 0 : index
    %c16_77 = arith.constant 16 : index
    %215 = vector.load %arg13[%c0_76, %c16_77] : memref<16x32xf32, #tpu.memory_space<vmem>>, vector<16x8xf32>
    tpu.vector_store %arg13[%c0_76, %c16_77], %214 {strides = array<i32>} : memref<16x32xf32, #tpu.memory_space<vmem>>, vector<16x8xf32>,
    %216 = vector.extract_strided_slice %146 {offsets = [0, 24], sizes = [16, 8], strides = [1, 1]} : vector<16x32xf32> to vector<16x8xf32>
    %217 = vector.shape_cast %216 : vector<16x8xf32> to vector<2x8x8xf32>
    %218 = vector.extract_strided_slice %149 {offsets = [0, 24], sizes = [16, 8], strides = [1, 1]} : vector<16x64xf32> to vector<16x8xf32>
    %219 = vector.shape_cast %218 : vector<16x8xf32> to vector<2x8x8xf32>
    %220 = vector.extract_strided_slice %149 {offsets = [0, 56], sizes = [16, 8], strides = [1, 1]} : vector<16x64xf32> to vector<16x8xf32>
    %221 = vector.shape_cast %220 : vector<16x8xf32> to vector<2x8x8xf32>
    "tpu.trace_start"() <{level = 10 : i32, message = "bqd,bkd->bqk"}> : () -> ()
    %cst_78 = arith.constant dense<0.000000e+00> : vector<2x8x8xf32>
    %222 = tpu.matmul %217, %219, %cst_78 {dimension_numbers = #tpu.dot_dimension_numbers<[2], [2], [1], [1], [0, 0, 0, 1, 1, 1], [0], [0]>} : vector<2x8x8xf32>, vector<2x8x8xf32>, vector<2x8x8xf32> -> vector<2x8x8xf32>
    "tpu.trace_stop"() : () -> ()
    %223 = arith.addf %222, %152 : vector<2x8x8xf32>
    %cst_79 = arith.constant dense<0xFF800000> : vector<2x8xf32>
    %224 = vector.multi_reduction <maximumf>, %223, %cst_79 [2] : vector<2x8x8xf32> to vector<2x8xf32>
    %225 = vector.shape_cast %224 : vector<2x8xf32> to vector<2x8x1xf32>
    %226 = vector.broadcast %225 : vector<2x8x1xf32> to vector<2x8x8xf32>
    %227 = arith.subf %223, %226 : vector<2x8x8xf32>
    %228 = math.exp %227 : vector<2x8x8xf32>
    %cst_80 = arith.constant dense<0.000000e+00> : vector<2x8xf32>
    %229 = vector.multi_reduction <add>, %228, %cst_80 [2] : vector<2x8x8xf32> to vector<2x8xf32>
    %230 = vector.shape_cast %229 : vector<2x8xf32> to vector<2x8x1xf32>
    %231 = tpu.reciprocal %230 {approx = true} : vector<2x8x1xf32> -> vector<2x8x1xf32>
    %232 = vector.broadcast %231 : vector<2x8x1xf32> to vector<2x8x8xf32>
    %233 = arith.mulf %228, %232 : vector<2x8x8xf32>
    "tpu.trace_start"() <{level = 10 : i32, message = "bqk,bkd->bqd"}> : () -> ()
    %cst_81 = arith.constant dense<0.000000e+00> : vector<2x8x8xf32>
    %234 = tpu.matmul %233, %221, %cst_81 {dimension_numbers = #tpu.dot_dimension_numbers<[2], [1], [1], [2], [0, 0, 0, 1, 1, 2], [0], [0]>} : vector<2x8x8xf32>, vector<2x8x8xf32>, vector<2x8x8xf32> -> vector<2x8x8xf32>
    "tpu.trace_stop"() : () -> ()
    %235 = vector.shape_cast %234 : vector<2x8x8xf32> to vector<16x8xf32>
    %c0_82 = arith.constant 0 : index
    %c24_83 = arith.constant 24 : index
    %236 = vector.load %arg13[%c0_82, %c24_83] : memref<16x32xf32, #tpu.memory_space<vmem>>, vector<16x8xf32>
    tpu.vector_store %arg13[%c0_82, %c24_83], %235 {strides = array<i32>} : memref<16x32xf32, #tpu.memory_space<vmem>>, vector<16x8xf32>,
    %c0_84 = arith.constant 0 : index
    %c0_85 = arith.constant 0 : index
    %237 = vector.load %arg13[%c0_84, %c0_85] : memref<16x32xf32, #tpu.memory_space<vmem>>, vector<16x32xf32>
    %cst_86 = arith.constant dense<0.000000e+00> : vector<16x32xf32>
    %238 = tpu.matmul %237, %3, %cst_86 {dimension_numbers = #tpu.dot_dimension_numbers<[1], [0], [0], [1], [0, 0, 1, 1], [], []>} : vector<16x32xf32>, vector<32x32xf32>, vector<16x32xf32> -> vector<16x32xf32>
    %239 = vector.broadcast %9 : vector<1x32xf32> to vector<16x32xf32>
    %240 = arith.addf %238, %239 : vector<16x32xf32>
    %241 = arith.addf %138, %240 : vector<16x32xf32>
    %cst_87 = arith.constant dense<0.000000e+00> : vector<16xf32>
    %242 = vector.multi_reduction <add>, %241, %cst_87 [1] : vector<16x32xf32> to vector<16xf32>
    %243 = vector.shape_cast %242 : vector<16xf32> to vector<16x1xf32>
    %cst_88 = arith.constant 3.200000e+01 : f32
    %244 = vector.broadcast %cst_88 : f32 to vector<16x1xf32>
    %245 = arith.divf %243, %244 : vector<16x1xf32>
    %246 = vector.broadcast %245 : vector<16x1xf32> to vector<16x32xf32>
    %247 = arith.subf %241, %246 : vector<16x32xf32>
    %248 = arith.mulf %247, %247 : vector<16x32xf32>
    %cst_89 = arith.constant dense<0.000000e+00> : vector<16xf32>
    %249 = vector.multi_reduction <add>, %248, %cst_89 [1] : vector<16x32xf32> to vector<16xf32>
    %250 = vector.shape_cast %249 : vector<16xf32> to vector<16x1xf32>
    %cst_90 = arith.constant 3.100000e+01 : f32
    %251 = vector.broadcast %cst_90 : f32 to vector<16x1xf32>
    %252 = arith.divf %250, %251 : vector<16x1xf32>
    %253 = math.sqrt %252 : vector<16x1xf32>
    %cst_91 = arith.constant 9.99999997E-7 : f32
    %254 = vector.broadcast %cst_91 : f32 to vector<16x1xf32>
    %255 = arith.addf %253, %254 : vector<16x1xf32>
    %256 = tpu.reciprocal %255 : vector<16x1xf32> -> vector<16x1xf32>
    %257 = vector.broadcast %245 : vector<16x1xf32> to vector<16x32xf32>
    %258 = arith.subf %241, %257 : vector<16x32xf32>
    %259 = vector.broadcast %10 : vector<1x32xf32> to vector<16x32xf32>
    %260 = arith.mulf %259, %258 : vector<16x32xf32>
    %261 = vector.broadcast %256 : vector<16x1xf32> to vector<16x32xf32>
    %262 = arith.mulf %260, %261 : vector<16x32xf32>
    %263 = vector.broadcast %11 : vector<1x32xf32> to vector<16x32xf32>
    %264 = arith.addf %262, %263 : vector<16x32xf32>
    %cst_92 = arith.constant dense<0.000000e+00> : vector<16x64xf32>
    %265 = tpu.matmul %264, %5, %cst_92 {dimension_numbers = #tpu.dot_dimension_numbers<[1], [0], [0], [1], [0, 0, 1, 1], [], []>} : vector<16x32xf32>, vector<32x64xf32>, vector<16x64xf32> -> vector<16x64xf32>
    %266 = vector.broadcast %14 : vector<1x64xf32> to vector<16x64xf32>
    %267 = arith.addf %265, %266 : vector<16x64xf32>
    %cst_93 = arith.constant 0.000000e+00 : f32
    %268 = vector.broadcast %cst_93 : f32 to vector<16x64xf32>
    %269 = arith.maximumf %267, %268 : vector<16x64xf32>
    %cst_94 = arith.constant dense<0.000000e+00> : vector<16x32xf32>
    %270 = tpu.matmul %269, %6, %cst_94 {dimension_numbers = #tpu.dot_dimension_numbers<[1], [0], [0], [1], [0, 0, 1, 1], [], []>} : vector<16x64xf32>, vector<64x32xf32>, vector<16x32xf32> -> vector<16x32xf32>
    %271 = vector.broadcast %12 : vector<1x32xf32> to vector<16x32xf32>
    %272 = arith.addf %270, %271 : vector<16x32xf32>
    %273 = arith.addf %264, %272 : vector<16x32xf32>
    %cst_95 = arith.constant dense<0.000000e+00> : vector<16xf32>
    %274 = vector.multi_reduction <add>, %273, %cst_95 [1] : vector<16x32xf32> to vector<16xf32>
    %275 = vector.shape_cast %274 : vector<16xf32> to vector<16x1xf32>
    %cst_96 = arith.constant 3.200000e+01 : f32
    %276 = vector.broadcast %cst_96 : f32 to vector<16x1xf32>
    %277 = arith.divf %275, %276 : vector<16x1xf32>
    %278 = vector.broadcast %277 : vector<16x1xf32> to vector<16x32xf32>
    %279 = arith.subf %273, %278 : vector<16x32xf32>
    %280 = arith.mulf %279, %279 : vector<16x32xf32>
    %cst_97 = arith.constant dense<0.000000e+00> : vector<16xf32>
    %281 = vector.multi_reduction <add>, %280, %cst_97 [1] : vector<16x32xf32> to vector<16xf32>
    %282 = vector.shape_cast %281 : vector<16xf32> to vector<16x1xf32>
    %cst_98 = arith.constant 3.100000e+01 : f32
    %283 = vector.broadcast %cst_98 : f32 to vector<16x1xf32>
    %284 = arith.divf %282, %283 : vector<16x1xf32>
    %285 = math.sqrt %284 : vector<16x1xf32>
    %cst_99 = arith.constant 9.99999997E-7 : f32
    %286 = vector.broadcast %cst_99 : f32 to vector<16x1xf32>
    %287 = arith.addf %285, %286 : vector<16x1xf32>
    %288 = tpu.reciprocal %287 : vector<16x1xf32> -> vector<16x1xf32>
    %289 = vector.broadcast %277 : vector<16x1xf32> to vector<16x32xf32>
    %290 = arith.subf %273, %289 : vector<16x32xf32>
    %291 = vector.broadcast %10 : vector<1x32xf32> to vector<16x32xf32>
    %292 = arith.mulf %291, %290 : vector<16x32xf32>
    %293 = vector.broadcast %288 : vector<16x1xf32> to vector<16x32xf32>
    %294 = arith.mulf %292, %293 : vector<16x32xf32>
    %295 = vector.broadcast %11 : vector<1x32xf32> to vector<16x32xf32>
    %296 = arith.addf %294, %295 : vector<16x32xf32>
    %c0_100 = arith.constant 0 : index
    %c0_101 = arith.constant 0 : index
    %297 = vector.load %arg12[%c0_100, %c0_101] : memref<16x32xf32, #tpu.memory_space<vmem>>, vector<16x32xf32>
    tpu.vector_store %arg12[%c0_100, %c0_101], %296 {strides = array<i32>} : memref<16x32xf32, #tpu.memory_space<vmem>>, vector<16x32xf32>,
    return
  }
  func.func @transform_0(%arg0: i32) -> (i32, i32) {
    %c0_i32 = arith.constant 0 : i32
    %c0_i32_0 = arith.constant 0 : i32
    %c0_i32_1 = arith.constant 0 : i32
    return %c0_i32, %c0_i32_0 : i32, i32
  }
  func.func @transform_1(%arg0: i32) -> (i32, i32) {
    %c0_i32 = arith.constant 0 : i32
    %c0_i32_0 = arith.constant 0 : i32
    %c0_i32_1 = arith.constant 0 : i32
    return %c0_i32, %c0_i32_0 : i32, i32
  }
  func.func @transform_2(%arg0: i32) -> (i32, i32) {
    %c0_i32 = arith.constant 0 : i32
    %c0_i32_0 = arith.constant 0 : i32
    %c0_i32_1 = arith.constant 0 : i32
    return %c0_i32, %c0_i32_0 : i32, i32
  }
  func.func @transform_3(%arg0: i32) -> (i32, i32, i32) {
    %c0_i32 = arith.constant 0 : i32
    %c0_i32_0 = arith.constant 0 : i32
    %c0_i32_1 = arith.constant 0 : i32
    %c0_i32_2 = arith.constant 0 : i32
    return %c0_i32, %c0_i32_0, %c0_i32_1 : i32, i32, i32
  }
  func.func @transform_4(%arg0: i32) -> (i32, i32, i32) {
    %c0_i32 = arith.constant 0 : i32
    %c0_i32_0 = arith.constant 0 : i32
    %c0_i32_1 = arith.constant 0 : i32
    %c0_i32_2 = arith.constant 0 : i32
    return %c0_i32, %c0_i32_0, %c0_i32_1 : i32, i32, i32
  }
  func.func @transform_5(%arg0: i32) -> (i32, i32) {
    %c0_i32 = arith.constant 0 : i32
    %c0_i32_0 = arith.constant 0 : i32
    %c0_i32_1 = arith.constant 0 : i32
    return %c0_i32, %c0_i32_0 : i32, i32
  }
  func.func @transform_6(%arg0: i32) -> (i32, i32) {
    %c0_i32 = arith.constant 0 : i32
    %c0_i32_0 = arith.constant 0 : i32
    %c0_i32_1 = arith.constant 0 : i32
    return %c0_i32, %c0_i32_0 : i32, i32
  }
  func.func @transform_7(%arg0: i32) -> (i32, i32) {
    %c0_i32 = arith.constant 0 : i32
    %c0_i32_0 = arith.constant 0 : i32
    %c0_i32_1 = arith.constant 0 : i32
    return %c0_i32, %c0_i32_0 : i32, i32
  }
  func.func @transform_8(%arg0: i32) -> (i32, i32) {
    %c0_i32 = arith.constant 0 : i32
    %c0_i32_0 = arith.constant 0 : i32
    %c0_i32_1 = arith.constant 0 : i32
    return %c0_i32, %c0_i32_0 : i32, i32
  }
  func.func @transform_9(%arg0: i32) -> (i32, i32) {
    %c0_i32 = arith.constant 0 : i32
    %c0_i32_0 = arith.constant 0 : i32
    %c0_i32_1 = arith.constant 0 : i32
    return %c0_i32, %c0_i32_0 : i32, i32
  }
  func.func @transform_10(%arg0: i32) -> (i32, i32) {
    %c0_i32 = arith.constant 0 : i32
    %c0_i32_0 = arith.constant 0 : i32
    %c0_i32_1 = arith.constant 0 : i32
    return %c0_i32, %c0_i32_0 : i32, i32
  }
  func.func @transform_11(%arg0: i32) -> (i32, i32) {
    %c0_i32 = arith.constant 0 : i32
    %c0_i32_0 = arith.constant 0 : i32
    %c0_i32_1 = arith.constant 0 : i32
    return %c0_i32, %c0_i32_0 : i32, i32
  }
}

</mosaic_0001>

<bundles_post_ra>
// kernel: tpu_custom_call.1
= control target key start
LH: loop header
LB: loop body
LE: loop exit
PB: predicated region body
PF: predicated region fallthrough
CT: control target
= control target key end

     0   :  { %16 = vsyncpa [#allocation4], 0  ;;  %s5059_s0 = inlined_call_operand.hbm [shape: f32[16,32], index: 0, kind: input, shape index: {}]   ;;  %s5060_s1 = inlined_call_operand.hbm [shape: f32[16,32], index: 1, kind: input, shape index: {}]   ;;  %s5061_s2 = inlined_call_operand.hbm [shape: f32[16,32], index: 2, kind: input, shape index: {}]   ;;  %s5062_s3 = inlined_call_operand.hbm [shape: f32[2,8,8], index: 3, kind: input, shape index: {}]   ;;  %s5063_s4 = inlined_call_operand.vmem [shape: f32[2,32,32], index: 4, kind: input, shape index: {}]   ;;  %s5064_s5 = inlined_call_operand.vmem [shape: f32[32,64], index: 5, kind: input, shape index: {}]   ;;  %s5065_s6 = inlined_call_operand.hbm [shape: f32[32,64], index: 6, kind: input, shape index: {}]   ;;  %s5066_s7 = inlined_call_operand.vmem [shape: f32[64,32], index: 7, kind: input, shape index: {}]   ;;  %s5067_s8 = inlined_call_operand.vmem [shape: f32[5,32], index: 8, kind: input, shape index: {}]   ;;  %s5068_s9 = inlined_call_operand.vmem [shape: f32[1,64], index: 9, kind: input, shape index: {}]   ;;  %s5069_s10 = inlined_call_operand.vmem [shape: f32[1,64], index: 10, kind: input, shape index: {}]   ;;  %s5070_s11 = inlined_call_operand.hbm [shape: f32[16,32], index: 11, kind: output, shape index: {}]  }
   0x1   :  { %17 = vsyncpa [#allocation7], 0 }
   0x2   :  { %18 = vsyncpa [#allocation10], 0 }
   0x3   :  { %19 = vsyncpa [#allocation5], 0  ;;  %s4367_s17 = smov [#allocation6]   ;;  %s4368_s19 = smov [#allocation9]  }
   0x4   :  { %s37_s18 = sshll.u32 %s4367_s17, 4  ;;  %s61_s20 = sshll.u32 %s4368_s19, 4  ;;  %s38_s18 = int_to_ptr.vmem [resolvable:$true] %s37_s18  ;;  %s62_s20 = int_to_ptr.vmem [resolvable:$true] %s61_s20 }
   0x5   :  { %s4247_s21 = scalar_lea.vmem %s38_s18, 256  ;;  %p4252_p1 = scmp.lt.s32.totalorder %s38_s18, %s38_s18 }
   0x6   :  { %p4248_p0 = scmp.ne.s32.totalorder %s38_s18, %s4247_s21  ;;  %p4253_p2 = scmp.lt.s32.totalorder %s4247_s21, %s4247_s21 }
   0x8   :  { %p4254_p3 = por %p4253_p2, %p4252_p1 }
   0xa   :  { %p4255_p4 = pnand %p4254_p3, %p4248_p0 }
   0xc   :  { %4258 = shalt.err (!%p4255_p4)
}
   0xd   :  { %s4369_s22 = smov 128   ;;  %s4370_s23 = smov 8  }
   0xe   :  { %43 = dma.hbm_to_vmem [thread:$0]  %s5060_s1, 256, %s38_s18, [#allocation7], %s4369_s22, %s4369_s22, %s4370_s23  }
   0xf   :  { %s4267_s26 = scalar_lea.vmem %s62_s20, 256  ;;  %p4272_p6 = scmp.lt.s32.totalorder %s62_s20, %s62_s20 }
  0x10   :  { %p4268_p5 = scmp.ne.s32.totalorder %s62_s20, %s4267_s26  ;;  %p4273_p7 = scmp.lt.s32.totalorder %s4267_s26, %s4267_s26 }
  0x12   :  { %p4274_p8 = por %p4273_p7, %p4272_p6 }
  0x14   :  { %p4275_p9 = pnand %p4274_p8, %p4268_p5 }
  0x16   :  { %4278 = shalt.err (!%p4275_p9)
}
  0x17   :  { %67 = dma.hbm_to_vmem [thread:$0]  %s5062_s3, 256, %s62_s20, [#allocation10], %s4369_s22, %s4369_s22, %s4370_s23  }
  0x18   :  { %s4371_s29 = smov [#allocation3]   ;;  %s4372_s12 = smov [#allocation8]  }
  0x19   :  { %s25_s30 = sshll.u32 %s4371_s29, 4  ;;  %s49_s13 = sshll.u32 %s4372_s12, 4  ;;  %s26_s30 = int_to_ptr.vmem [resolvable:$true] %s25_s30  ;;  %s50_s13 = int_to_ptr.vmem [resolvable:$true] %s49_s13 }
  0x1a   :  { %s4287_s1 = scalar_lea.vmem %s26_s30, 256  ;;  %p4292_p11 = scmp.lt.s32.totalorder %s26_s30, %s26_s30 }
  0x1b   :  { %p4288_p10 = scmp.ne.s32.totalorder %s26_s30, %s4287_s1  ;;  %p4293_p12 = scmp.lt.s32.totalorder %s4287_s1, %s4287_s1 }
  0x1d   :  { %p4294_p13 = por %p4293_p12, %p4292_p11 }
  0x1f   :  { %p4295_p0 = pnand %p4294_p13, %p4288_p10 }
  0x21   :  { %4298 = shalt.err (!%p4295_p0)
}
  0x22   :  { %31 = dma.hbm_to_vmem [thread:$0]  %s5059_s0, 256, %s26_s30, [#allocation4], %s4369_s22, %s4369_s22, %s4370_s23  }
  0x23   :  { %s4307_s3 = scalar_lea.vmem %s50_s13, 256  ;;  %p4312_p2 = scmp.lt.s32.totalorder %s50_s13, %s50_s13 }
  0x24   :  { %p4308_p1 = scmp.ne.s32.totalorder %s50_s13, %s4307_s3  ;;  %p4313_p3 = scmp.lt.s32.totalorder %s4307_s3, %s4307_s3 }
  0x26   :  { %p4314_p4 = por %p4313_p3, %p4312_p2 }
  0x28   :  { %p4315_p5 = pnand %p4314_p4, %p4308_p1 }
  0x2a   :  { %4318 = shalt.err (!%p4315_p5)
}
  0x2b   :  { %55 = dma.hbm_to_vmem [thread:$0]  %s5061_s2, 256, %s50_s13, [#allocation7], %s4369_s22, %s4369_s22, %s4370_s23  }
  0x2c   :  { %s4373_s18 = smov [#allocation11]  }
  0x2d   :  { %s77_s19 = sshll.u32 %s4373_s18, 4  ;;  %s78_s19 = int_to_ptr.vmem [resolvable:$true] %s77_s19 }
  0x2e   :  { %s4327_s20 = scalar_lea.vmem %s78_s19, 512  ;;  %p4332_p7 = scmp.lt.s32.totalorder %s78_s19, %s78_s19 }
  0x2f   :  { %p4328_p6 = scmp.ne.s32.totalorder %s78_s19, %s4327_s20  ;;  %p4333_p8 = scmp.lt.s32.totalorder %s4327_s20, %s4327_s20 }
  0x31   :  { %p4334_p9 = por %p4333_p8, %p4332_p7 }
  0x33   :  { %p4335_p10 = pnand %p4334_p9, %p4328_p6 }
  0x35   :  { %4338 = shalt.err (!%p4335_p10)
}
  0x36   :  { %83 = dma.hbm_to_vmem [thread:$0]  %s5065_s6, 512, %s78_s19, [#allocation10], %s4369_s22, %s4369_s22, %s4370_s23  }
  0x37   :  { %4359 = dma.done.wait [#allocation4], 256  }
  0x38   :  { %4360 = vsyncadd [#allocation4], 4294967040 }
  0x39   :  { %4361 = dma.done.wait [#allocation7], 512  }
  0x3a   :  { %4362 = vsyncadd [#allocation7], 4294966784 }
  0x3b   :  { %4363 = dma.done.wait [#allocation10], 768  }
  0x3c   :  { %4364 = vsyncadd [#allocation10], 4294966528  ;;  %vm142_vm0 = vcmask 261120   ;;  %v4479_v0 = vld [vmem:[%s5063_s4 + $0x18] sm:$0xff]  ;;  %v4484_v1 = vld [vmem:[%s5063_s4 + $0x10] sm:$0xff]  ;;  %v4374_v10 = vmov 0.0   ;;  %v138_v11 = vlaneseq }
  0x3d   :  { %3875 = vmatprep.subr.mxu1 %v4479_v0  ;;  %v4487_v2 = vld [vmem:[#allocation3] sm:$0xff]  ;;  %v4493_v3 = vld [vmem:[%s5063_s4 + $0x8] sm:$0xff]  ;;  %v4502_v4 = vld [vmem:[%s5063_s4] sm:$0xff]  ;;  %3897 = vmatprep.subr.mxu0 %v4374_v10  ;;  %vm4375_vm1 = vmmov 0   ;;  %vm305_vm2 = vcmask 64512   ;;  %s4376_s20 = smov 96  }
  0x3e   :  { %3876 = vmatpush3.msra.mxu1 %v4479_v0  ;;  %3883 = vmatprep.mubr.msk.f32.mxu1 %vm142_vm0, %v4487_v2  ;;  %v4506_v5 = vld [vmem:[#allocation3 + $0x8] sm:$0xff]  ;;  %v4518_v7 = vld [vmem:[%s5064_s5 + $0x10] sm:$0xff]  ;;  %v4527_v8 = vld [vmem:[%s5064_s5 + $0x8] sm:$0xff]  ;;  %v4550_v12 = vshrl.u32 %v138_v11, 7  ;;  %s4378_s0 = smov 88   ;;  %s4379_s21 = smov 112  }
  0x3f   :  { %3877 = vmatprep.subr.mxu1 %v4484_v1  ;;  %v4511_v6 = vld [vmem:[%s5064_s5 + $0x18] sm:$0xff]  ;;  %v4536_v9 = vld [vmem:[%s5064_s5] sm:$0xff]  ;;  %3899 = vmatprep.mubr.msk.f32.mxu0 %vm4375_vm1, %v4374_v10  ;;  %s4380_s2 = smov 80   ;;  %s4381_s24 = smov 104   ;;  %vm972_vm3 = vcmask 130112   ;;  %vm1313_vm4 = vcmask 195712  }
  0x40   :  { %3878 = vmatpush3.msra.mxu1 %v4484_v1  ;;  %v140_v14 = vsub.s32 0, %v4550_v12  ;;  %v4556_v15 = vld [vmem:[%s5067_s8] sm:$0x1f]  ;;  %s4382_s25 = smov 72   ;;  %s4383_s26 = smov 16   ;;  %vm1654_vm5 = vcmask 261312  }
  0x41   :  { %3879 = vmatprep.subr.mxu1 %v4493_v3  ;;  %v4561_v17 = vld [vmem:[%s5068_s9] ss:$0 sm:$0xff]  ;;  %s4377_s9 = smov 120   ;;  %s4384_s14 = smov 24   ;;  %vm3540_vm14 = vcmask 523264  }
  0x42   :  { %3880 = vmatpush3.msra.mxu1 %v4493_v3  ;;  %v4564_v18 = vrot.slane %v4556_v15, %v140_v14  ;;  %v4599_v27 = vld [vmem:[#allocation9] sm:$0xff] }
  0x43   :  { %3881 = vmatprep.subr.mxu1 %v4502_v4 }
  0x44   :  { %3882 = vmatpush3.msra.mxu1 %v4502_v4 }
  0x45   :  { %3884 = vmatmul.mubr.msk.f32.vlgmr.msra.gmra.mxu1 %vm142_vm0, %v4506_v5  ;;  %3886 = vmatprep.subr.mxu1 %v4511_v6 }
  0x46   :  { %3887 = vmatpush3.msra.mxu1 %v4511_v6  ;;  %3894 = vmatprep.mubr.msk.f32.mxu1 %vm142_vm0, %v4487_v2 }
  0x47   :  { %3888 = vmatprep.subr.mxu1 %v4518_v7 }
  0x48   :  { %3889 = vmatpush3.msra.mxu1 %v4518_v7 }
  0x49   :  { %3890 = vmatprep.subr.mxu1 %v4527_v8 }
  0x4a   :  { %3891 = vmatpush3.msra.mxu1 %v4527_v8 }
  0x4b   :  { %3892 = vmatprep.subr.mxu1 %v4536_v9 }
  0x4c   :  { %3893 = vmatpush3.msra.mxu1 %v4536_v9 }
  0x4d   :  { %3895 = vmatmul.mubr.msk.f32.vlgmr.msra.gmra.mxu1 %vm142_vm0, %v4506_v5  ;;  %3902 = vmatprep.subr.mxu1 %v4374_v10 }
  0x4e   :  { %3904 = vmatprep.mubr.msk.f32.mxu1 %vm4375_vm1, %v4374_v10 }
 0x105   :  { %v3885_v13 = vpop.f32.mrf.mxu1 }
 0x106   :  { %v4577_v23 = vadd.f32 %v3885_v13, %v4564_v18 }
 0x107   :  { %v215_v16 = vpop.f32.mrf.mxu1 }
 0x108   :  { %v4583_v24 = vadd.f32 %v215_v16, %v4564_v18 }
 0x10d   :  { %v3896_v19 = vpop.f32.mrf.mxu1 }
 0x10e   :  { %v4567_v20 = vadd.f32 %v3896_v19, %v4561_v17 }
 0x10f   :  { %v296_v21 = vpop.f32.mrf.mxu1 }
 0x110   :  { %v4570_v22 = vadd.f32 %v4561_v17, %v296_v21  ;;  %556 = vrot.lane.b32.xlu1 %v4567_v20, %s4376_s20  ;;  %3903 = vmatpush3.xpose.msk.msra.mxu1 %vm305_vm2, %v4567_v20 }
 0x111   :  { %3912 = vmatprep.subr.mxu1 %v4374_v10 }
 0x112   :  { %3898 = vmatpush3.xpose.msk.msra.mxu0 %vm305_vm2, %v4570_v22 }
 0x113   :  { %3905 = vmatmul.mubr.msk.f32.vlgmr.msra.gmra.mxu1 %vm305_vm2, %v4577_v23  ;;  %3907 = vmatprep.subr.mxu0 %v4374_v10 }
 0x114   :  { %636 = vrot.lane.b32.xlu1 %v4570_v22, %s4377_s9  ;;  %3914 = vmatprep.mubr.msk.f32.mxu1 %vm4375_vm1, %v4374_v10 }
 0x115   :  { %3900 = vmatmul.mubr.msk.f32.vlgmr.msra.gmra.mxu0 %vm305_vm2, %v4583_v24 }
 0x116   :  { %3909 = vmatprep.mubr.msk.f32.mxu0 %vm4375_vm1, %v4374_v10 }
 0x118   :  { %714 = vrot.lane.b32.xlu1 %v4567_v20, %s4377_s9 }
 0x182   :  { %v557_v25 = vpop.permute.xlu1 %556 }
 0x183   :  { %3913 = vmatpush3.msra.mxu1 %v557_v25 }
 0x184   :  { %3922 = vmatprep.subr.mxu1 %v4374_v10 }
 0x186   :  { %v637_v46 = vpop.permute.xlu1 %636 }
 0x18a   :  { %v715_v47 = vpop.permute.xlu1 %714 }
 0x1d3   :  { %v454_v26 = vpop.f32.mrf.mxu1 }
 0x1d4   :  { %v455_v32 = vadd.f32 %v454_v26, %v4599_v27 }
 0x1d5   :  { %v378_v28 = vpop.f32.mrf.mxu0  ;;  %v3906_v29 = vpop.f32.mrf.mxu1 }
 0x1d6   :  { %v379_v30 = vadd.f32 %v378_v28, %v4599_v27  ;;  %v461_v34 = vsel %vm305_vm2, %v455_v32, -inf }
 0x1d7   :  { %v3901_v31 = vpop.f32.mrf.mxu0 }
 0x1d8   :  { %v458_v33 = vsel %vm305_vm2, %v379_v30, -inf }
 0x1d9   :  { %459 = vmax.xlane.f32.xlu0 %v458_v33 }
 0x1dd   :  { %462 = vmax.xlane.f32.xlu0 %v461_v34 }
 0x1f3   :  { %480 = vrot.lane.b32.xlu0 %v4570_v22, %s4376_s20 }
 0x1f7   :  { %634 = vrot.lane.b32.xlu0 %v4583_v24, %s4377_s9 }
 0x262   :  { %v460_v35 = vpop.xlane.xlu0 %459 }
 0x263   :  { %v464_v36 = vsub.f32 %v379_v30, %v460_v35 }
 0x265   :  { %v466_v39 = vmul.f32 1.442695, %v464_v36 }
 0x266   :  { %v463_v37 = vpop.xlane.xlu0 %462 }
 0x267   :  { %v465_v38 = vsub.f32 %v455_v32, %v463_v37 }
 0x269   :  { %v468_v40 = vmul.f32 1.442695, %v465_v38 }
 0x26a   :  { %v481_v41 = vpop.permute.xlu0 %480 }
 0x26b   :  { %4150 = vpow2.f32 %v468_v40  ;;  %3908 = vmatpush3.msra.mxu0 %v481_v41 }
 0x26c   :  { %3917 = vmatprep.subr.mxu0 %v4374_v10  ;;  %4152 = vpow2.f32 %v466_v39 }
 0x26e   :  { %v635_v55 = vpop.permute.xlu0 %634 }
 0x278   :  { %v4151_v42 = vpop.eup %4150 }
 0x279   :  { %v473_v43 = vsel %vm305_vm2, %v4151_v42, 0.0  ;;  %v4153_v44 = vpop.eup %4152 }
 0x27a   :  { %474 = vadd.xlane.f32.xlu1 %v473_v43  ;;  %v470_v45 = vsel %vm305_vm2, %v4153_v44, 0.0 }
 0x27e   :  { %471 = vadd.xlane.f32.xlu1 %v470_v45 }
 0x28f   :  { %712 = vrot.lane.b32.xlu1 %v4577_v23, %s4377_s9 }
 0x303   :  { %v475_v48 = vpop.xlane.xlu1 %474 }
 0x304   :  { %4154 = vrcp.f32 %v475_v48 }
 0x307   :  { %v472_v49 = vpop.xlane.xlu1 %471 }
 0x308   :  { %4156 = vrcp.f32 %v472_v49 }
 0x30b   :  { %v713_v54 = vpop.permute.xlu1 %712 }
 0x311   :  { %v4155_v50 = vpop.eup %4154 }
 0x312   :  { %v479_v51 = vmul.f32 %v4155_v50, %v4151_v42 }
 0x314   :  { %3915 = vmatmul.mubr.msk.f32.vlgmr.msra.gmra.mxu1 %vm305_vm2, %v479_v51 }
 0x315   :  { %v4157_v52 = vpop.eup %4156  ;;  %3923 = vmatpush3.xpose.msk.msra.mxu1 %vm305_vm2, %v715_v47  ;;  %3924 = vmatprep.mubr.msk.f32.mxu1 %vm4375_vm1, %v4374_v10 }
 0x316   :  { %v478_v53 = vmul.f32 %v4157_v52, %v4153_v44  ;;  %3932 = vmatprep.subr.mxu1 %v4374_v10 }
 0x318   :  { %3910 = vmatmul.mubr.msk.f32.vlgmr.msra.gmra.mxu0 %vm305_vm2, %v478_v53  ;;  %3925 = vmatmul.mubr.msk.f32.vlgmr.msra.gmra.mxu1 %vm305_vm2, %v713_v54 }
 0x319   :  { %3918 = vmatpush3.xpose.msk.msra.mxu0 %vm305_vm2, %v637_v46  ;;  %3919 = vmatprep.mubr.msk.f32.mxu0 %vm4375_vm1, %v4374_v10 }
 0x31a   :  { %3927 = vmatprep.subr.mxu0 %v4374_v10  ;;  %3934 = vmatprep.mubr.msk.f32.mxu1 %vm4375_vm1, %v4374_v10 }
 0x31c   :  { %3920 = vmatmul.mubr.msk.f32.vlgmr.msra.gmra.mxu0 %vm305_vm2, %v635_v55 }
 0x31d   :  { %3929 = vmatprep.mubr.msk.f32.mxu0 %vm4375_vm1, %v4374_v10 }
 0x3d4   :  { %v628_v56 = vpop.f32.mrf.mxu1 }
 0x3d5   :  { %633 = vst.msk [vmem:[#allocation2 + $0x8] sm:$0xff] %vm305_vm2, %v628_v56 }
 0x3d6   :  { %v3916_v57 = vpop.f32.mrf.mxu1 }
 0x3d8   :  { %v552_v58 = vpop.f32.mrf.mxu0  ;;  %v786_v59 = vpop.f32.mrf.mxu1 }
 0x3d9   :  { %632 = vst.msk [vmem:[#allocation2] sm:$0xff] %vm305_vm2, %v552_v58  ;;  %v787_v60 = vadd.f32 %v786_v59, %v4599_v27 }
 0x3da   :  { %v3911_v61 = vpop.f32.mrf.mxu0  ;;  %v3926_v62 = vpop.f32.mrf.mxu1 }
 0x3db   :  { %v793_v63 = vsel %vm305_vm2, %v787_v60, -inf }
 0x3dc   :  { %794 = vmax.xlane.f32.xlu1 %v793_v63  ;;  %v708_v11 = vpop.f32.mrf.mxu0 }
 0x3dd   :  { %v709_v13 = vadd.f32 %v708_v11, %v4599_v27 }
 0x3de   :  { %v3921_v14 = vpop.f32.mrf.mxu0 }
 0x3df   :  { %v790_v16 = vsel %vm305_vm2, %v709_v13, -inf }
 0x3e0   :  { %791 = vmax.xlane.f32.xlu0 %v790_v16 }
 0x3ed   :  { %888 = vrot.lane.b32.xlu1 %v4567_v20, %s4378_s0 }
 0x3f1   :  { %977 = vrot.lane.b32.xlu1 %v4570_v22, %s4379_s21 }
 0x3f5   :  { %1055 = vrot.lane.b32.xlu1 %v4567_v20, %s4379_s21 }
 0x3f9   :  { %1053 = vrot.lane.b32.xlu1 %v4577_v23, %s4379_s21 }
 0x465   :  { %v795_v19 = vpop.xlane.xlu1 %794 }
 0x466   :  { %v797_v21 = vsub.f32 %v787_v60, %v795_v19 }
 0x468   :  { %v800_v25 = vmul.f32 1.442695, %v797_v21 }
 0x469   :  { %v889_v26 = vpop.permute.xlu1 %888  ;;  %v792_v28 = vpop.xlane.xlu0 %791 }
 0x46a   :  { %4158 = vpow2.f32 %v800_v25  ;;  %v796_v29 = vsub.f32 %v709_v13, %v792_v28  ;;  %3933 = vmatpush3.msra.mxu1 %v889_v26 }
 0x46b   :  { %3942 = vmatprep.subr.mxu1 %v4374_v10 }
 0x46c   :  { %v798_v30 = vmul.f32 1.442695, %v796_v29 }
 0x46d   :  { %v978_v37 = vpop.permute.xlu1 %977 }
 0x46e   :  { %4160 = vpow2.f32 %v798_v30 }
 0x471   :  { %v1056_v40 = vpop.permute.xlu1 %1055 }
 0x475   :  { %v1054_v44 = vpop.permute.xlu1 %1053 }
 0x477   :  { %v4159_v31 = vpop.eup %4158 }
 0x478   :  { %v805_v32 = vsel %vm305_vm2, %v4159_v31, 0.0 }
 0x479   :  { %806 = vadd.xlane.f32.xlu0 %v805_v32 }
 0x47b   :  { %v4161_v33 = vpop.eup %4160 }
 0x47c   :  { %v802_v34 = vsel %vm305_vm2, %v4161_v33, 0.0 }
 0x47d   :  { %803 = vadd.xlane.f32.xlu0 %v802_v34 }
 0x493   :  { %812 = vrot.lane.b32.xlu0 %v4570_v22, %s4378_s0 }
 0x497   :  { %975 = vrot.lane.b32.xlu0 %v4583_v24, %s4379_s21 }
 0x502   :  { %v807_v35 = vpop.xlane.xlu0 %806 }
 0x503   :  { %4162 = vrcp.f32 %v807_v35 }
 0x506   :  { %v804_v36 = vpop.xlane.xlu0 %803 }
 0x507   :  { %4164 = vrcp.f32 %v804_v36 }
 0x50a   :  { %v813_v38 = vpop.permute.xlu0 %812 }
 0x50b   :  { %3928 = vmatpush3.msra.mxu0 %v813_v38 }
 0x50c   :  { %3937 = vmatprep.subr.mxu0 %v4374_v10 }
 0x50e   :  { %v976_v45 = vpop.permute.xlu0 %975 }
 0x510   :  { %v4163_v39 = vpop.eup %4162 }
 0x511   :  { %v811_v41 = vmul.f32 %v4163_v39, %v4159_v31 }
 0x513   :  { %3935 = vmatmul.mubr.msk.f32.vlgmr.msra.gmra.mxu1 %vm305_vm2, %v811_v41 }
 0x514   :  { %v4165_v42 = vpop.eup %4164  ;;  %3943 = vmatpush3.xpose.msk.msra.mxu1 %vm305_vm2, %v1056_v40  ;;  %3944 = vmatprep.mubr.msk.f32.mxu1 %vm4375_vm1, %v4374_v10 }
 0x515   :  { %v810_v43 = vmul.f32 %v4165_v42, %v4161_v33  ;;  %3952 = vmatprep.subr.mxu1 %v4374_v10 }
 0x517   :  { %3930 = vmatmul.mubr.msk.f32.vlgmr.msra.gmra.mxu0 %vm305_vm2, %v810_v43  ;;  %3945 = vmatmul.mubr.msk.f32.vlgmr.msra.gmra.mxu1 %vm305_vm2, %v1054_v44 }
 0x518   :  { %3938 = vmatpush3.xpose.msk.msra.mxu0 %vm305_vm2, %v978_v37  ;;  %3939 = vmatprep.mubr.msk.f32.mxu0 %vm4375_vm1, %v4374_v10 }
 0x519   :  { %3947 = vmatprep.subr.mxu0 %v4374_v10  ;;  %3954 = vmatprep.mubr.msk.f32.mxu1 %vm4375_vm1, %v4374_v10 }
 0x51b   :  { %3940 = vmatmul.mubr.msk.f32.vlgmr.msra.gmra.mxu0 %vm305_vm2, %v976_v45 }
 0x51c   :  { %3949 = vmatprep.mubr.msk.f32.mxu0 %vm4375_vm1, %v4374_v10 }
 0x5d3   :  { %v4668_v46 = vpop.f32.mrf.mxu1 }
 0x5d5   :  { %v3936_v47 = vpop.f32.mrf.mxu1 }
 0x5d7   :  { %v4670_v48 = vpop.f32.mrf.mxu0  ;;  %v1127_v49 = vpop.f32.mrf.mxu1 }
 0x5d8   :  { %v1128_v50 = vadd.f32 %v1127_v49, %v4599_v27 }
 0x5d9   :  { %v3931_v51 = vpop.f32.mrf.mxu0  ;;  %v3946_v52 = vpop.f32.mrf.mxu1 }
 0x5da   :  { %v1134_v53 = vsel %vm305_vm2, %v1128_v50, -inf }
 0x5db   :  { %1135 = vmax.xlane.f32.xlu1 %v1134_v53  ;;  %v1049_v54 = vpop.f32.mrf.mxu0 }
 0x5dc   :  { %v1050_v55 = vadd.f32 %v1049_v54, %v4599_v27 }
 0x5dd   :  { %v3941_v56 = vpop.f32.mrf.mxu0 }
 0x5de   :  { %v1131_v57 = vsel %vm305_vm2, %v1050_v55, -inf }
 0x5df   :  { %1132 = vmax.xlane.f32.xlu0 %v1131_v57 }
 0x5ec   :  { %1229 = vrot.lane.b32.xlu1 %v4567_v20, %s4380_s2 }
 0x5f0   :  { %1318 = vrot.lane.b32.xlu1 %v4570_v22, %s4381_s24 }
 0x5f4   :  { %1396 = vrot.lane.b32.xlu1 %v4567_v20, %s4381_s24 }
 0x5f8   :  { %1394 = vrot.lane.b32.xlu1 %v4577_v23, %s4381_s24 }
 0x664   :  { %v1136_v58 = vpop.xlane.xlu1 %1135 }
 0x665   :  { %v1138_v59 = vsub.f32 %v1128_v50, %v1136_v58 }
 0x667   :  { %v1141_v60 = vmul.f32 1.442695, %v1138_v59 }
 0x668   :  { %v1230_v61 = vpop.permute.xlu1 %1229  ;;  %v1133_v62 = vpop.xlane.xlu0 %1132 }
 0x669   :  { %4166 = vpow2.f32 %v1141_v60  ;;  %v1137_v63 = vsub.f32 %v1050_v55, %v1133_v62  ;;  %3953 = vmatpush3.msra.mxu1 %v1230_v61 }
 0x66a   :  { %3962 = vmatprep.subr.mxu1 %v4374_v10 }
 0x66b   :  { %v1139_v11 = vmul.f32 1.442695, %v1137_v63 }
 0x66c   :  { %v1319_v25 = vpop.permute.xlu1 %1318 }
 0x66d   :  { %4168 = vpow2.f32 %v1139_v11 }
 0x670   :  { %v1397_v29 = vpop.permute.xlu1 %1396 }
 0x674   :  { %v1395_v32 = vpop.permute.xlu1 %1394 }
 0x676   :  { %v4167_v13 = vpop.eup %4166 }
 0x677   :  { %v1146_v14 = vsel %vm305_vm2, %v4167_v13, 0.0 }
 0x678   :  { %1147 = vadd.xlane.f32.xlu0 %v1146_v14 }
 0x67a   :  { %v4169_v16 = vpop.eup %4168 }
 0x67b   :  { %v1143_v19 = vsel %vm305_vm2, %v4169_v16, 0.0 }
 0x67c   :  { %1144 = vadd.xlane.f32.xlu0 %v1143_v19 }
 0x692   :  { %1153 = vrot.lane.b32.xlu0 %v4570_v22, %s4380_s2 }
 0x696   :  { %1316 = vrot.lane.b32.xlu0 %v4583_v24, %s4381_s24 }
 0x701   :  { %v1148_v23 = vpop.xlane.xlu0 %1147 }
 0x702   :  { %4170 = vrcp.f32 %v1148_v23 }
 0x705   :  { %v1145_v21 = vpop.xlane.xlu0 %1144 }
 0x706   :  { %4172 = vrcp.f32 %v1145_v21 }
 0x709   :  { %v1154_v26 = vpop.permute.xlu0 %1153 }
 0x70a   :  { %3948 = vmatpush3.msra.mxu0 %v1154_v26 }
 0x70b   :  { %3957 = vmatprep.subr.mxu0 %v4374_v10 }
 0x70d   :  { %v1317_v33 = vpop.permute.xlu0 %1316 }
 0x70f   :  { %v4171_v28 = vpop.eup %4170 }
 0x710   :  { %v1152_v30 = vmul.f32 %v4171_v28, %v4167_v13  ;;  %v1661_v28 = vsub.s32 1, %v4550_v12 }
 0x712   :  { %3955 = vmatmul.mubr.msk.f32.vlgmr.msra.gmra.mxu1 %vm305_vm2, %v1152_v30 }
 0x713   :  { %v4173_v31 = vpop.eup %4172  ;;  %3963 = vmatpush3.xpose.msk.msra.mxu1 %vm305_vm2, %v1397_v29  ;;  %3964 = vmatprep.mubr.msk.f32.mxu1 %vm4375_vm1, %v4374_v10  ;;  %v4784_v29 = vrot.slane %v4556_v15, %v1661_v28 }
 0x714   :  { %v1151_v24 = vmul.f32 %v4173_v31, %v4169_v16  ;;  %3972 = vmatprep.subr.mxu1 %v4374_v10 }
 0x716   :  { %3950 = vmatmul.mubr.msk.f32.vlgmr.msra.gmra.mxu0 %vm305_vm2, %v1151_v24  ;;  %3965 = vmatmul.mubr.msk.f32.vlgmr.msra.gmra.mxu1 %vm305_vm2, %v1395_v32 }
 0x717   :  { %3958 = vmatpush3.xpose.msk.msra.mxu0 %vm305_vm2, %v1319_v25  ;;  %3959 = vmatprep.mubr.msk.f32.mxu0 %vm4375_vm1, %v4374_v10 }
 0x718   :  { %3967 = vmatprep.subr.mxu0 %v4374_v10  ;;  %3974 = vmatprep.mubr.msk.f32.mxu1 %vm4375_vm1, %v4374_v10 }
 0x71a   :  { %3960 = vmatmul.mubr.msk.f32.vlgmr.msra.gmra.mxu0 %vm305_vm2, %v1317_v33 }
 0x71b   :  { %3969 = vmatprep.mubr.msk.f32.mxu0 %vm4375_vm1, %v4374_v10 }
 0x7d2   :  { %v1301_v34 = vpop.f32.mrf.mxu1 }
 0x7d4   :  { %v3956_v35 = vpop.f32.mrf.mxu1 }
 0x7d6   :  { %v1225_v36 = vpop.f32.mrf.mxu0  ;;  %v1468_v37 = vpop.f32.mrf.mxu1 }
 0x7d7   :  { %v1469_v38 = vadd.f32 %v1468_v37, %v4599_v27 }
 0x7d8   :  { %v3951_v39 = vpop.f32.mrf.mxu0  ;;  %v3966_v40 = vpop.f32.mrf.mxu1 }
 0x7d9   :  { %v1475_v41 = vsel %vm305_vm2, %v1469_v38, -inf }
 0x7da   :  { %1476 = vmax.xlane.f32.xlu1 %v1475_v41  ;;  %v1390_v42 = vpop.f32.mrf.mxu0 }
 0x7db   :  { %v1391_v43 = vadd.f32 %v1390_v42, %v4599_v27  ;;  %v1800_v42 = vld [vmem:[#allocation6] sm:$0xff] }
 0x7dc   :  { %v3961_v44 = vpop.f32.mrf.mxu0 }
 0x7dd   :  { %v1472_v45 = vsel %vm305_vm2, %v1391_v43, -inf }
 0x7de   :  { %1473 = vmax.xlane.f32.xlu0 %v1472_v45  ;;  %v1803_v45 = vld [vmem:[#allocation8 + $0x8] sm:$0xff] }
 0x7eb   :  { %1570 = vrot.lane.b32.xlu1 %v4567_v20, %s4382_s25 }
 0x7ef   :  { %966 = vrot.lane.b32.xlu1 %v4670_v48, %s4370_s23 }
 0x7f3   :  { %968 = vrot.lane.b32.xlu1 %v4668_v46, %s4370_s23 }
 0x7f7   :  { %1309 = vrot.lane.b32.xlu1 %v1301_v34, %s4383_s26 }
 0x863   :  { %v1477_v47 = vpop.xlane.xlu1 %1476 }
 0x864   :  { %v1479_v49 = vsub.f32 %v1469_v38, %v1477_v47 }
 0x866   :  { %v1482_v27 = vmul.f32 1.442695, %v1479_v49 }
 0x867   :  { %v1571_v50 = vpop.permute.xlu1 %1570  ;;  %v1474_v51 = vpop.xlane.xlu0 %1473 }
 0x868   :  { %4174 = vpow2.f32 %v1482_v27  ;;  %v1478_v52 = vsub.f32 %v1391_v43, %v1474_v51  ;;  %3973 = vmatpush3.msra.mxu1 %v1571_v50  ;;  %v1801_v43 = vld [vmem:[#allocation6 + $0x8] sm:$0xff] }
 0x869   :  { %3988 = vmatprep.subr.mxu1 %v4479_v0  ;;  %v1805_v47 = vadd.f32 %v1803_v45, %v1801_v43 }
 0x86a   :  { %v1480_v20 = vmul.f32 1.442695, %v1478_v52 }
 0x86b   :  { %v967_v53 = vpop.permute.xlu1 %966 }
 0x86c   :  { %4176 = vpow2.f32 %v1480_v20  ;;  %973 = vst.msk [vmem:[#allocation2] sm:$0xff] %vm972_vm3, %v967_v53 }
 0x86f   :  { %v969_v46 = vpop.permute.xlu1 %968 }
 0x870   :  { %974 = vst.msk [vmem:[#allocation2 + $0x8] sm:$0xff] %vm972_vm3, %v969_v46 }
 0x873   :  { %v1310_v48 = vpop.permute.xlu1 %1309 }
 0x874   :  { %1315 = vst.msk [vmem:[#allocation2 + $0x8] sm:$0xff] %vm1313_vm4, %v1310_v48 }
 0x875   :  { %v4175_v54 = vpop.eup %4174 }
 0x876   :  { %v1487_v55 = vsel %vm305_vm2, %v4175_v54, 0.0 }
 0x877   :  { %1488 = vadd.xlane.f32.xlu0 %v1487_v55 }
 0x879   :  { %v4177_v56 = vpop.eup %4176 }
 0x87a   :  { %v1484_v57 = vsel %vm305_vm2, %v4177_v56, 0.0 }
 0x87b   :  { %1485 = vadd.xlane.f32.xlu0 %v1484_v57 }
 0x891   :  { %1494 = vrot.lane.b32.xlu0 %v4570_v22, %s4382_s25 }
 0x895   :  { %1307 = vrot.lane.b32.xlu0 %v1225_v36, %s4383_s26 }
 0x900   :  { %v1489_v58 = vpop.xlane.xlu0 %1488 }
 0x901   :  { %4178 = vrcp.f32 %v1489_v58 }
 0x904   :  { %v1486_v59 = vpop.xlane.xlu0 %1485 }
 0x905   :  { %4180 = vrcp.f32 %v1486_v59 }
 0x908   :  { %v1495_v60 = vpop.permute.xlu0 %1494 }
 0x909   :  { %3968 = vmatpush3.msra.mxu0 %v1495_v60 }
 0x90c   :  { %v1308_v61 = vpop.permute.xlu0 %1307 }
 0x90d   :  { %1314 = vst.msk [vmem:[#allocation2] sm:$0xff] %vm1313_vm4, %v1308_v61  ;;  %v1788_v61 = vsub.s32 2, %v4550_v12 }
 0x90e   :  { %v4179_v62 = vpop.eup %4178 }
 0x90f   :  { %v1493_v63 = vmul.f32 %v4179_v62, %v4175_v54  ;;  %v1796_v62 = vsub.s32 3, %v4550_v12 }
 0x911   :  { %3975 = vmatmul.mubr.msk.f32.vlgmr.msra.gmra.mxu1 %vm305_vm2, %v1493_v63  ;;  %v4801_v63 = vrot.slane %v4556_v15, %v1788_v61 }
 0x912   :  { %v4181_v11 = vpop.eup %4180  ;;  %3989 = vmatpush3.msra.mxu1 %v4479_v0  ;;  %v4742_v0 = vld [vmem:[%s5063_s4 + $0x38] sm:$0xff] }
 0x913   :  { %v1492_v13 = vmul.f32 %v4181_v11, %v4177_v56  ;;  %3990 = vmatprep.subr.mxu1 %v4484_v1  ;;  %3977 = vmatprep.subr.mxu0 %v4742_v0  ;;  %v4804_v11 = vrot.slane %v4556_v15, %v1796_v62 }
 0x914   :  { %3991 = vmatpush3.msra.mxu1 %v4484_v1  ;;  %v4747_v1 = vld [vmem:[%s5063_s4 + $0x30] sm:$0xff] }
 0x915   :  { %3970 = vmatmul.mubr.msk.f32.vlgmr.msra.gmra.mxu0 %vm305_vm2, %v1492_v13  ;;  %3992 = vmatprep.subr.mxu1 %v4493_v3 }
 0x916   :  { %3993 = vmatpush3.msra.mxu1 %v4493_v3  ;;  %3978 = vmatpush3.msra.mxu0 %v4742_v0  ;;  %v4754_v3 = vld [vmem:[%s5063_s4 + $0x28] sm:$0xff] }
 0x917   :  { %3994 = vmatprep.subr.mxu1 %v4502_v4  ;;  %3979 = vmatprep.subr.mxu0 %v4747_v1 }
 0x918   :  { %3995 = vmatpush3.msra.mxu1 %v4502_v4  ;;  %3980 = vmatpush3.msra.mxu0 %v4747_v1  ;;  %v4761_v4 = vld [vmem:[%s5063_s4 + $0x20] sm:$0xff] }
 0x919   :  { %4010 = vmatprep.subr.mxu1 %v4374_v10  ;;  %3981 = vmatprep.subr.mxu0 %v4754_v3 }
 0x91a   :  { %3982 = vmatpush3.msra.mxu0 %v4754_v3 }
 0x91b   :  { %3983 = vmatprep.subr.mxu0 %v4761_v4 }
 0x91c   :  { %3984 = vmatpush3.msra.mxu0 %v4761_v4 }
 0x91d   :  { %3999 = vmatprep.subr.mxu0 %v4511_v6 }
 0x9d1   :  { %v1642_v22 = vpop.f32.mrf.mxu1 }
 0x9d2   :  { %1650 = vrot.lane.b32.xlu1 %v1642_v22, %s4384_s14 }
 0x9d3   :  { %v3976_v14 = vpop.f32.mrf.mxu1 }
 0x9d5   :  { %v1566_v16 = vpop.f32.mrf.mxu0 }
 0x9d6   :  { %1648 = vrot.lane.b32.xlu0 %v1566_v16, %s4384_s14 }
 0x9d7   :  { %v3971_v19 = vpop.f32.mrf.mxu0 }
 0xa44   :  { %v1651_v23 = vpop.permute.xlu1 %1650 }
 0xa45   :  { %1656 = vst.msk [vmem:[#allocation2 + $0x8] sm:$0xff] %vm1654_vm5, %v1651_v23 }
 0xa48   :  { %v1649_v21 = vpop.permute.xlu0 %1648 }
 0xa49   :  { %1655 = vst.msk [vmem:[#allocation2] sm:$0xff] %vm1654_vm5, %v1649_v21 }
 0xa4c   :  { %v1658_v26 = vld [vmem:[#allocation2 + $0x8] sm:$0xff] }
 0xa50   :  { %v1657_v25 = vld [vmem:[#allocation2] sm:$0xff] }
 0xa51   :  { %3985 = vmatprep.mubr.msk.f32.mxu0 %vm142_vm0, %v1657_v25 }
 0xa52   :  { %3986 = vmatmul.mubr.msk.f32.vlgmr.msra.gmra.mxu0 %vm142_vm0, %v1658_v26 }
 0xa53   :  { %4000 = vmatpush3.msra.mxu0 %v4511_v6 }
 0xa54   :  { %4001 = vmatprep.subr.mxu0 %v4518_v7 }
 0xa55   :  { %4002 = vmatpush3.msra.mxu0 %v4518_v7 }
 0xa56   :  { %4003 = vmatprep.subr.mxu0 %v4527_v8 }
 0xa57   :  { %4004 = vmatpush3.msra.mxu0 %v4527_v8 }
 0xa58   :  { %4005 = vmatprep.subr.mxu0 %v4536_v9 }
 0xa59   :  { %4006 = vmatpush3.msra.mxu0 %v4536_v9 }
 0xa5a   :  { %4020 = vmatprep.subr.mxu0 %v4374_v10 }
 0xb12   :  { %v3987_v6 = vpop.f32.mrf.mxu0 }
 0xb13   :  { %v1741_v30 = vadd.f32 %v3987_v6, %v4784_v29 }
 0xb14   :  { %v1735_v31 = vpop.f32.mrf.mxu0 }
 0xb15   :  { %v1736_v7 = vadd.f32 %v1735_v31, %v4784_v29  ;;  %v1745_v24 = vadd.f32 %v1741_v30, %v4506_v5 }
 0xb17   :  { %v1749_v8 = vsel %vm142_vm0, %v1745_v24, 0.0  ;;  %v1744_v32 = vadd.f32 %v1736_v7, %v4487_v2  ;;  %v1802_v2 = vld [vmem:[#allocation8] sm:$0xff] }
 0xb18   :  { %1750 = vadd.xlane.f32.xlu1 %v1749_v8  ;;  %v1804_v44 = vadd.f32 %v1802_v2, %v1800_v42 }
 0xb19   :  { %v1746_v9 = vsel %vm142_vm0, %v1744_v32, 0.0 }
 0xb1a   :  { %1747 = vadd.xlane.f32.xlu0 %v1746_v9  ;;  %4007 = vmatprep.mubr.msk.f32.mxu0 %vm142_vm0, %v1804_v44 }
 0xb1b   :  { %4008 = vmatmul.mubr.msk.f32.vlgmr.msra.gmra.mxu0 %vm142_vm0, %v1805_v47 }
 0xb1c   :  { %4022 = vmatprep.mubr.msk.f32.mxu0 %vm4375_vm1, %v4374_v10 }
 0xba1   :  { %v1751_v33 = vpop.xlane.xlu1 %1750 }
 0xba2   :  { %v1754_v34 = vmul.f32 0.03125, %v1751_v33 }
 0xba3   :  { %v1748_v35 = vpop.xlane.xlu0 %1747 }
 0xba4   :  { %v1753_v36 = vmul.f32 0.03125, %v1748_v35  ;;  %v1756_v37 = vsub.f32 %v1745_v24, %v1754_v34 }
 0xba6   :  { %v1755_v38 = vsub.f32 %v1744_v32, %v1753_v36  ;;  %v1758_v41 = vmul.f32 %v1756_v37, %v1756_v37  ;;  %v1791_v16 = vmul.f32 %v4801_v63, %v1756_v37 }
 0xba8   :  { %v1757_v39 = vmul.f32 %v1755_v38, %v1755_v38  ;;  %v1762_v5 = vsel %vm142_vm0, %v1758_v41, 0.0  ;;  %v1790_v13 = vmul.f32 %v4801_v63, %v1755_v38 }
 0xbaa   :  { %v1759_v40 = vsel %vm142_vm0, %v1757_v39, 0.0 }
 0xbab   :  { %1760 = vadd.xlane.f32.xlu0 %v1759_v40 }
 0xbaf   :  { %1763 = vadd.xlane.f32.xlu0 %v1762_v5 }
 0xbdb   :  { %v4009_v15 = vpop.f32.mrf.mxu0 }
 0xbdc   :  { %v4830_v7 = vadd.f32 %v4009_v15, %v4561_v17 }
 0xbdd   :  { %v1961_v26 = vpop.f32.mrf.mxu0 }
 0xbde   :  { %v4821_v28 = vadd.f32 %v4561_v17, %v1961_v26  ;;  %v4846_v17 = vld [vmem:[#allocation9 + $0x8] sm:$0xff] }
 0xc34   :  { %v1761_v49 = vpop.xlane.xlu0 %1760 }
 0xc35   :  { %v1766_v27 = vmul.f32 0.032258064, %v1761_v49 }
 0xc37   :  { %4182 = vrsqrt.f32 %v1766_v27  ;;  %vm1770_vm6 = vcmp.eq.f32.partialorder %v1766_v27, inf  ;;  %v1773_v53 = vand.u32 2147483648, %v1766_v27  ;;  %vm1772_vm7 = vcmp.eq.f32.partialorder %v1766_v27, 0.0 }
 0xc38   :  { %v1764_v50 = vpop.xlane.xlu0 %1763 }
 0xc39   :  { %v1767_v51 = vmul.f32 0.032258064, %v1764_v50 }
 0xc3b   :  { %4184 = vrsqrt.f32 %v1767_v51  ;;  %vm1777_vm8 = vcmp.eq.f32.partialorder %v1767_v51, inf  ;;  %v1780_v57 = vand.u32 2147483648, %v1767_v51  ;;  %vm1779_vm9 = vcmp.eq.f32.partialorder %v1767_v51, 0.0 }
 0xc44   :  { %v4183_v52 = vpop.eup %4182 }
 0xc45   :  { %v1769_v20 = vmul.f32 %v4183_v52, %v1766_v27 }
 0xc47   :  { %v1771_v46 = vsel %vm1770_vm6, %v1766_v27, %v1769_v20 }
 0xc48   :  { %v4185_v48 = vpop.eup %4184  ;;  %v1774_v54 = vsel %vm1772_vm7, %v1773_v53, %v1771_v46 }
 0xc49   :  { %v1782_v55 = vadd.f32 1e-06, %v1774_v54  ;;  %v1776_v56 = vmul.f32 %v4185_v48, %v1767_v51 }
 0xc4b   :  { %4186 = vrcp.f32 %v1782_v55  ;;  %v1778_v58 = vsel %vm1777_vm8, %v1767_v51, %v1776_v56 }
 0xc4c   :  { %v1781_v59 = vsel %vm1779_vm9, %v1780_v57, %v1778_v58 }
 0xc4d   :  { %v1783_v60 = vadd.f32 1e-06, %v1781_v59 }
 0xc4f   :  { %4188 = vrcp.f32 %v1783_v60 }
 0xc58   :  { %v4187_v22 = vpop.eup %4186 }
 0xc59   :  { %v1792_v14 = vmul.f32 %v4187_v22, %v1790_v13 }
 0xc5b   :  { %v4809_v19 = vadd.f32 %v4804_v11, %v1792_v14 }
 0xc5c   :  { %v4189_v23 = vpop.eup %4188 }
 0xc5d   :  { %3996 = vmatprep.mubr.msk.f32.mxu1 %vm142_vm0, %v4809_v19  ;;  %v1793_v21 = vmul.f32 %v4189_v23, %v1791_v16 }
 0xc5f   :  { %v4814_v25 = vadd.f32 %v4804_v11, %v1793_v21 }
 0xc61   :  { %3997 = vmatmul.mubr.msk.f32.vlgmr.msra.gmra.mxu1 %vm142_vm0, %v4814_v25 }
 0xc62   :  { %4012 = vmatprep.mubr.msk.f32.mxu1 %vm4375_vm1, %v4374_v10  ;;  %4011 = vmatpush3.xpose.msk.msra.mxu1 %vm305_vm2, %v4821_v28 }
 0xc63   :  { %4015 = vmatprep.subr.mxu1 %v4374_v10 }
 0xd21   :  { %v3998_v6 = vpop.f32.mrf.mxu1 }
 0xd22   :  { %v4839_v24 = vadd.f32 %v3998_v6, %v4564_v18 }
 0xd23   :  { %v1880_v30 = vpop.f32.mrf.mxu1 }
 0xd24   :  { %v4827_v31 = vadd.f32 %v1880_v30, %v4564_v18 }
 0xd26   :  { %4013 = vmatmul.mubr.msk.f32.vlgmr.msra.gmra.mxu1 %vm305_vm2, %v4827_v31 }
 0xd27   :  { %4016 = vmatpush3.xpose.msk.msra.mxu1 %vm305_vm2, %v4830_v7  ;;  %4017 = vmatprep.mubr.msk.f32.mxu1 %vm4375_vm1, %v4374_v10 }
 0xd28   :  { %4025 = vmatprep.subr.mxu1 %v4374_v10 }
 0xd2a   :  { %4018 = vmatmul.mubr.msk.f32.vlgmr.msra.gmra.mxu1 %vm305_vm2, %v4839_v24 }
 0xd2b   :  { %4027 = vmatprep.mubr.msk.f32.mxu1 %vm4375_vm1, %v4374_v10 }
 0xde6   :  { %v2042_v8 = vpop.f32.mrf.mxu1 }
 0xde7   :  { %v2043_v32 = vadd.f32 %v2042_v8, %v4846_v17 }
 0xde8   :  { %v4014_v9 = vpop.f32.mrf.mxu1 }
 0xde9   :  { %v2122_v33 = vsel %vm305_vm2, %v2043_v32, -inf }
 0xdea   :  { %2123 = vmax.xlane.f32.xlu0 %v2122_v33  ;;  %v2118_v34 = vpop.f32.mrf.mxu1 }
 0xdeb   :  { %v2119_v18 = vadd.f32 %v2118_v34, %v4846_v17 }
 0xdec   :  { %v4019_v35 = vpop.f32.mrf.mxu1 }
 0xded   :  { %v2125_v36 = vsel %vm305_vm2, %v2119_v18, -inf }
 0xdee   :  { %2126 = vmax.xlane.f32.xlu1 %v2125_v36 }
 0xdff   :  { %2220 = vrot.lane.b32.xlu1 %v4830_v7, %s4376_s20 }
 0xe03   :  { %2300 = vrot.lane.b32.xlu1 %v4821_v28, %s4377_s9 }
 0xe07   :  { %2378 = vrot.lane.b32.xlu1 %v4830_v7, %s4377_s9 }
 0xe73   :  { %v2124_v37 = vpop.xlane.xlu0 %2123 }
 0xe74   :  { %v2128_v38 = vsub.f32 %v2043_v32, %v2124_v37 }
 0xe76   :  { %v2130_v39 = vmul.f32 1.442695, %v2128_v38 }
 0xe77   :  { %v2127_v40 = vpop.xlane.xlu1 %2126 }
 0xe78   :  { %4190 = vpow2.f32 %v2130_v39  ;;  %v2129_v41 = vsub.f32 %v2119_v18, %v2127_v40 }
 0xe7a   :  { %v2132_v5 = vmul.f32 1.442695, %v2129_v41 }
 0xe7b   :  { %v2221_v42 = vpop.permute.xlu1 %2220 }
 0xe7c   :  { %4192 = vpow2.f32 %v2132_v5  ;;  %4026 = vmatpush3.msra.mxu1 %v2221_v42 }
 0xe7d   :  { %4035 = vmatprep.subr.mxu1 %v4374_v10 }
 0xe7f   :  { %v2301_v47 = vpop.permute.xlu1 %2300 }
 0xe83   :  { %v2379_v49 = vpop.permute.xlu1 %2378 }
 0xe85   :  { %v4191_v2 = vpop.eup %4190 }
 0xe86   :  { %v2134_v43 = vsel %vm305_vm2, %v4191_v2, 0.0 }
 0xe87   :  { %2135 = vadd.xlane.f32.xlu0 %v2134_v43 }
 0xe89   :  { %v4193_v44 = vpop.eup %4192 }
 0xe8a   :  { %v2137_v45 = vsel %vm305_vm2, %v4193_v44, 0.0 }
 0xe8b   :  { %2138 = vadd.xlane.f32.xlu1 %v2137_v45 }
 0xe9c   :  { %2376 = vrot.lane.b32.xlu1 %v4839_v24, %s4377_s9 }
 0xe9d   :  { %2144 = vrot.lane.b32.xlu0 %v4821_v28, %s4376_s20 }
 0xea1   :  { %2298 = vrot.lane.b32.xlu0 %v4827_v31, %s4377_s9 }
 0xf10   :  { %v2136_v27 = vpop.xlane.xlu0 %2135 }
 0xf11   :  { %4194 = vrcp.f32 %v2136_v27 }
 0xf14   :  { %v2145_v50 = vpop.permute.xlu0 %2144  ;;  %v2139_v51 = vpop.xlane.xlu1 %2138 }
 0xf15   :  { %4196 = vrcp.f32 %v2139_v51  ;;  %4021 = vmatpush3.msra.mxu0 %v2145_v50 }
 0xf16   :  { %4030 = vmatprep.subr.mxu0 %v4374_v10 }
 0xf18   :  { %v2299_v48 = vpop.permute.xlu0 %2298  ;;  %v2377_v54 = vpop.permute.xlu1 %2376 }
 0xf1e   :  { %v4195_v52 = vpop.eup %4194 }
 0xf1f   :  { %v2142_v20 = vmul.f32 %v4195_v52, %v4191_v2 }
 0xf21   :  { %4023 = vmatmul.mubr.msk.f32.vlgmr.msra.gmra.mxu0 %vm305_vm2, %v2142_v20 }
 0xf22   :  { %v4197_v53 = vpop.eup %4196  ;;  %4031 = vmatpush3.xpose.msk.msra.mxu0 %vm305_vm2, %v2301_v47  ;;  %4032 = vmatprep.mubr.msk.f32.mxu0 %vm4375_vm1, %v4374_v10 }
 0xf23   :  { %v2143_v46 = vmul.f32 %v4197_v53, %v4193_v44  ;;  %4040 = vmatprep.subr.mxu0 %v4374_v10 }
 0xf25   :  { %4028 = vmatmul.mubr.msk.f32.vlgmr.msra.gmra.mxu1 %vm305_vm2, %v2143_v46  ;;  %4033 = vmatmul.mubr.msk.f32.vlgmr.msra.gmra.mxu0 %vm305_vm2, %v2299_v48 }
 0xf26   :  { %4036 = vmatpush3.xpose.msk.msra.mxu1 %vm305_vm2, %v2379_v49  ;;  %4037 = vmatprep.mubr.msk.f32.mxu1 %vm4375_vm1, %v4374_v10 }
 0xf27   :  { %4045 = vmatprep.subr.mxu1 %v4374_v10  ;;  %4042 = vmatprep.mubr.msk.f32.mxu0 %vm4375_vm1, %v4374_v10 }
 0xf29   :  { %4038 = vmatmul.mubr.msk.f32.vlgmr.msra.gmra.mxu1 %vm305_vm2, %v2377_v54 }
 0xf2a   :  { %4047 = vmatprep.mubr.msk.f32.mxu1 %vm4375_vm1, %v4374_v10 }
 0xfe1   :  { %v2216_v55 = vpop.f32.mrf.mxu0 }
 0xfe2   :  { %2296 = vst.msk [vmem:[#allocation2] sm:$0xff] %vm305_vm2, %v2216_v55 }
 0xfe3   :  { %v4024_v56 = vpop.f32.mrf.mxu0 }
 0xfe5   :  { %v2292_v57 = vpop.f32.mrf.mxu1  ;;  %v2372_v58 = vpop.f32.mrf.mxu0 }
 0xfe6   :  { %2297 = vst.msk [vmem:[#allocation2 + $0x8] sm:$0xff] %vm305_vm2, %v2292_v57  ;;  %v2373_v59 = vadd.f32 %v2372_v58, %v4846_v17 }
 0xfe7   :  { %v4029_v60 = vpop.f32.mrf.mxu1  ;;  %v4034_v61 = vpop.f32.mrf.mxu0 }
 0xfe8   :  { %v2454_v62 = vsel %vm305_vm2, %v2373_v59, -inf }
 0xfe9   :  { %2455 = vmax.xlane.f32.xlu0 %v2454_v62  ;;  %v2450_v13 = vpop.f32.mrf.mxu1 }
 0xfea   :  { %v2451_v22 = vadd.f32 %v2450_v13, %v4846_v17 }
 0xfeb   :  { %v4039_v14 = vpop.f32.mrf.mxu1 }
 0xfec   :  { %v2457_v16 = vsel %vm305_vm2, %v2451_v22, -inf }
 0xfed   :  { %2458 = vmax.xlane.f32.xlu1 %v2457_v16 }
 0xffe   :  { %2552 = vrot.lane.b32.xlu1 %v4830_v7, %s4378_s0 }
 0xfff   :  { %2476 = vrot.lane.b32.xlu0 %v4821_v28, %s4378_s0 }
0x1002   :  { %2640 = vrot.lane.b32.xlu1 %v4821_v28, %s4379_s21 }
0x1006   :  { %2718 = vrot.lane.b32.xlu1 %v4830_v7, %s4379_s21 }
0x100a   :  { %2716 = vrot.lane.b32.xlu1 %v4839_v24, %s4379_s21 }
0x1072   :  { %v2456_v23 = vpop.xlane.xlu0 %2455 }
0x1073   :  { %v2460_v21 = vsub.f32 %v2373_v59, %v2456_v23 }
0x1075   :  { %v2462_v15 = vmul.f32 1.442695, %v2460_v21 }
0x1076   :  { %v2477_v26 = vpop.permute.xlu0 %2476  ;;  %v2459_v6 = vpop.xlane.xlu1 %2458 }
0x1077   :  { %4198 = vpow2.f32 %v2462_v15  ;;  %v2461_v30 = vsub.f32 %v2451_v22, %v2459_v6  ;;  %4041 = vmatpush3.msra.mxu0 %v2477_v26 }
0x1078   :  { %4050 = vmatprep.subr.mxu0 %v4374_v10 }
0x1079   :  { %v2464_v8 = vmul.f32 1.442695, %v2461_v30 }
0x107a   :  { %v2553_v32 = vpop.permute.xlu1 %2552 }
0x107b   :  { %4200 = vpow2.f32 %v2464_v8  ;;  %4046 = vmatpush3.msra.mxu1 %v2553_v32 }
0x107c   :  { %4055 = vmatprep.subr.mxu1 %v4374_v10 }
0x107e   :  { %v2641_v37 = vpop.permute.xlu1 %2640 }
0x1082   :  { %v2719_v41 = vpop.permute.xlu1 %2718 }
0x1084   :  { %v4199_v9 = vpop.eup %4198 }
0x1085   :  { %v2466_v33 = vsel %vm305_vm2, %v4199_v9, 0.0 }
0x1086   :  { %2467 = vadd.xlane.f32.xlu0 %v2466_v33  ;;  %v2717_v2 = vpop.permute.xlu1 %2716 }
0x1088   :  { %v4201_v34 = vpop.eup %4200 }
0x1089   :  { %v2469_v18 = vsel %vm305_vm2, %v4201_v34, 0.0 }
0x108a   :  { %2470 = vadd.xlane.f32.xlu0 %v2469_v18 }
0x10a0   :  { %2638 = vrot.lane.b32.xlu0 %v4827_v31, %s4379_s21 }
0x110f   :  { %v2468_v35 = vpop.xlane.xlu0 %2467 }
0x1110   :  { %4202 = vrcp.f32 %v2468_v35 }
0x1113   :  { %v2471_v36 = vpop.xlane.xlu0 %2470 }
0x1114   :  { %4204 = vrcp.f32 %v2471_v36 }
0x1117   :  { %v2639_v42 = vpop.permute.xlu0 %2638 }
0x111d   :  { %v4203_v38 = vpop.eup %4202 }
0x111e   :  { %v2474_v39 = vmul.f32 %v4203_v38, %v4199_v9 }
0x1120   :  { %4043 = vmatmul.mubr.msk.f32.vlgmr.msra.gmra.mxu0 %vm305_vm2, %v2474_v39 }
0x1121   :  { %v4205_v40 = vpop.eup %4204  ;;  %4051 = vmatpush3.xpose.msk.msra.mxu0 %vm305_vm2, %v2641_v37  ;;  %4052 = vmatprep.mubr.msk.f32.mxu0 %vm4375_vm1, %v4374_v10 }
0x1122   :  { %v2475_v5 = vmul.f32 %v4205_v40, %v4201_v34  ;;  %4060 = vmatprep.subr.mxu0 %v4374_v10 }
0x1124   :  { %4048 = vmatmul.mubr.msk.f32.vlgmr.msra.gmra.mxu1 %vm305_vm2, %v2475_v5  ;;  %4053 = vmatmul.mubr.msk.f32.vlgmr.msra.gmra.mxu0 %vm305_vm2, %v2639_v42 }
0x1125   :  { %4056 = vmatpush3.xpose.msk.msra.mxu1 %vm305_vm2, %v2719_v41  ;;  %4057 = vmatprep.mubr.msk.f32.mxu1 %vm4375_vm1, %v4374_v10 }
0x1126   :  { %4065 = vmatprep.subr.mxu1 %v4374_v10  ;;  %4062 = vmatprep.mubr.msk.f32.mxu0 %vm4375_vm1, %v4374_v10 }
0x1128   :  { %4058 = vmatmul.mubr.msk.f32.vlgmr.msra.gmra.mxu1 %vm305_vm2, %v2717_v2 }
0x1129   :  { %4067 = vmatprep.mubr.msk.f32.mxu1 %vm4375_vm1, %v4374_v10 }
0x11e0   :  { %v4922_v43 = vpop.f32.mrf.mxu0 }
0x11e2   :  { %v4044_v44 = vpop.f32.mrf.mxu0 }
0x11e4   :  { %v4924_v45 = vpop.f32.mrf.mxu1  ;;  %v2712_v47 = vpop.f32.mrf.mxu0 }
0x11e5   :  { %v2713_v49 = vadd.f32 %v2712_v47, %v4846_v17 }
0x11e6   :  { %v4049_v27 = vpop.f32.mrf.mxu1  ;;  %v4054_v50 = vpop.f32.mrf.mxu0 }
0x11e7   :  { %v2794_v51 = vsel %vm305_vm2, %v2713_v49, -inf }
0x11e8   :  { %2795 = vmax.xlane.f32.xlu0 %v2794_v51  ;;  %v2790_v52 = vpop.f32.mrf.mxu1 }
0x11e9   :  { %v2791_v20 = vadd.f32 %v2790_v52, %v4846_v17 }
0x11ea   :  { %v4059_v53 = vpop.f32.mrf.mxu1 }
0x11eb   :  { %v2797_v46 = vsel %vm305_vm2, %v2791_v20, -inf }
0x11ec   :  { %2798 = vmax.xlane.f32.xlu1 %v2797_v46 }
0x11fd   :  { %2892 = vrot.lane.b32.xlu1 %v4830_v7, %s4380_s2 }
0x11fe   :  { %2816 = vrot.lane.b32.xlu0 %v4821_v28, %s4380_s2 }
0x1201   :  { %2980 = vrot.lane.b32.xlu1 %v4821_v28, %s4381_s24 }
0x1205   :  { %3058 = vrot.lane.b32.xlu1 %v4830_v7, %s4381_s24 }
0x1209   :  { %3056 = vrot.lane.b32.xlu1 %v4839_v24, %s4381_s24 }
0x1271   :  { %v2796_v48 = vpop.xlane.xlu0 %2795 }
0x1272   :  { %v2800_v54 = vsub.f32 %v2713_v49, %v2796_v48 }
0x1274   :  { %v2802_v55 = vmul.f32 1.442695, %v2800_v54 }
0x1275   :  { %v2817_v56 = vpop.permute.xlu0 %2816  ;;  %v2799_v57 = vpop.xlane.xlu1 %2798 }
0x1276   :  { %4206 = vpow2.f32 %v2802_v55  ;;  %v2801_v58 = vsub.f32 %v2791_v20, %v2799_v57  ;;  %4061 = vmatpush3.msra.mxu0 %v2817_v56 }
0x1277   :  { %4070 = vmatprep.subr.mxu0 %v4374_v10 }
0x1278   :  { %v2804_v59 = vmul.f32 1.442695, %v2801_v58 }
0x1279   :  { %v2893_v60 = vpop.permute.xlu1 %2892 }
0x127a   :  { %4208 = vpow2.f32 %v2804_v59  ;;  %4066 = vmatpush3.msra.mxu1 %v2893_v60 }
0x127b   :  { %4075 = vmatprep.subr.mxu1 %v4374_v10 }
0x127d   :  { %v2981_v16 = vpop.permute.xlu1 %2980 }
0x1281   :  { %v3059_v26 = vpop.permute.xlu1 %3058 }
0x1283   :  { %v4207_v61 = vpop.eup %4206 }
0x1284   :  { %v2806_v62 = vsel %vm305_vm2, %v4207_v61, 0.0 }
0x1285   :  { %2807 = vadd.xlane.f32.xlu0 %v2806_v62  ;;  %v3057_v30 = vpop.permute.xlu1 %3056 }
0x1287   :  { %v4209_v24 = vpop.eup %4208 }
0x1288   :  { %v2809_v13 = vsel %vm305_vm2, %v4209_v24, 0.0 }
0x1289   :  { %2810 = vadd.xlane.f32.xlu0 %v2809_v13 }
0x129f   :  { %2978 = vrot.lane.b32.xlu0 %v4827_v31, %s4381_s24 }
0x130e   :  { %v2808_v22 = vpop.xlane.xlu0 %2807 }
0x130f   :  { %4210 = vrcp.f32 %v2808_v22 }
0x1312   :  { %v2811_v14 = vpop.xlane.xlu0 %2810 }
0x1313   :  { %4212 = vrcp.f32 %v2811_v14 }
0x1316   :  { %v2979_v31 = vpop.permute.xlu0 %2978 }
0x131c   :  { %v4211_v23 = vpop.eup %4210 }
0x131d   :  { %v2814_v21 = vmul.f32 %v4211_v23, %v4207_v61 }
0x131f   :  { %4063 = vmatmul.mubr.msk.f32.vlgmr.msra.gmra.mxu0 %vm305_vm2, %v2814_v21 }
0x1320   :  { %v4213_v15 = vpop.eup %4212  ;;  %4071 = vmatpush3.xpose.msk.msra.mxu0 %vm305_vm2, %v2981_v16  ;;  %4072 = vmatprep.mubr.msk.f32.mxu0 %vm4375_vm1, %v4374_v10 }
0x1321   :  { %v2815_v6 = vmul.f32 %v4213_v15, %v4209_v24  ;;  %4080 = vmatprep.subr.mxu0 %v4374_v10 }
0x1323   :  { %4068 = vmatmul.mubr.msk.f32.vlgmr.msra.gmra.mxu1 %vm305_vm2, %v2815_v6  ;;  %4073 = vmatmul.mubr.msk.f32.vlgmr.msra.gmra.mxu0 %vm305_vm2, %v2979_v31 }
0x1324   :  { %4076 = vmatpush3.xpose.msk.msra.mxu1 %vm305_vm2, %v3059_v26  ;;  %4077 = vmatprep.mubr.msk.f32.mxu1 %vm4375_vm1, %v4374_v10 }
0x1325   :  { %4085 = vmatprep.subr.mxu1 %v4374_v10  ;;  %4082 = vmatprep.mubr.msk.f32.mxu0 %vm4375_vm1, %v4374_v10 }
0x1327   :  { %4078 = vmatmul.mubr.msk.f32.vlgmr.msra.gmra.mxu1 %vm305_vm2, %v3057_v30 }
0x1328   :  { %4087 = vmatprep.mubr.msk.f32.mxu1 %vm4375_vm1, %v4374_v10 }
0x13df   :  { %v2888_v8 = vpop.f32.mrf.mxu0 }
0x13e1   :  { %v4064_v32 = vpop.f32.mrf.mxu0 }
0x13e2   :  { %v121_v32 = vld [vmem:[#allocation11 + $0x8] sm:$0xff] }
0x13e3   :  { %v2964_v9 = vpop.f32.mrf.mxu1  ;;  %v3052_v33 = vpop.f32.mrf.mxu0 }
0x13e4   :  { %v3053_v34 = vadd.f32 %v3052_v33, %v4846_v17  ;;  %v131_v33 = vld [vmem:[%s5066_s7 + $0x38] sm:$0xff] }
0x13e5   :  { %v4069_v18 = vpop.f32.mrf.mxu1  ;;  %v4074_v35 = vpop.f32.mrf.mxu0 }
0x13e6   :  { %v3134_v36 = vsel %vm305_vm2, %v3053_v34, -inf  ;;  %v129_v18 = vld [vmem:[%s5066_s7 + $0x28] sm:$0xff]  ;;  %v128_v35 = vld [vmem:[%s5066_s7 + $0x20] sm:$0xff] }
0x13e7   :  { %3135 = vmax.xlane.f32.xlu0 %v3134_v36  ;;  %v3130_v37 = vpop.f32.mrf.mxu1 }
0x13e8   :  { %v3131_v38 = vadd.f32 %v3130_v37, %v4846_v17 }
0x13e9   :  { %v4079_v39 = vpop.f32.mrf.mxu1 }
0x13ea   :  { %v3137_v40 = vsel %vm305_vm2, %v3131_v38, -inf }
0x13eb   :  { %3138 = vmax.xlane.f32.xlu1 %v3137_v40 }
0x13fc   :  { %3232 = vrot.lane.b32.xlu1 %v4830_v7, %s4382_s25 }
0x1400   :  { %2630 = vrot.lane.b32.xlu1 %v4922_v43, %s4370_s23 }
0x1404   :  { %2632 = vrot.lane.b32.xlu1 %v4924_v45, %s4370_s23 }
0x1408   :  { %2972 = vrot.lane.b32.xlu1 %v2964_v9, %s4383_s26  ;;  %v120_v9 = vld [vmem:[#allocation11] sm:$0xff] }
0x1470   :  { %v3136_v10 = vpop.xlane.xlu0 %3135 }
0x1471   :  { %v3140_v41 = vsub.f32 %v3053_v34, %v3136_v10  ;;  %v130_v34 = vld [vmem:[%s5066_s7 + $0x30] sm:$0xff] }
0x1473   :  { %v3142_v5 = vmul.f32 1.442695, %v3140_v41 }
0x1474   :  { %v3139_v42 = vpop.xlane.xlu1 %3138 }
0x1475   :  { %4214 = vpow2.f32 %v3142_v5  ;;  %v3141_v17 = vsub.f32 %v3131_v38, %v3139_v42 }
0x1477   :  { %v3144_v2 = vmul.f32 1.442695, %v3141_v17 }
0x1478   :  { %v3233_v44 = vpop.permute.xlu1 %3232 }
0x1479   :  { %4216 = vpow2.f32 %v3144_v2  ;;  %4086 = vmatpush3.msra.mxu1 %v3233_v44 }
0x147c   :  { %v2631_v47 = vpop.permute.xlu1 %2630 }
0x147d   :  { %2636 = vst.msk [vmem:[#allocation2] sm:$0xff] %vm972_vm3, %v2631_v47 }
0x1480   :  { %v2633_v7 = vpop.permute.xlu1 %2632 }
0x1481   :  { %2637 = vst.msk [vmem:[#allocation2 + $0x8] sm:$0xff] %vm972_vm3, %v2633_v7 }
0x1482   :  { %v4215_v43 = vpop.eup %4214 }
0x1483   :  { %v3146_v45 = vsel %vm305_vm2, %v4215_v43, 0.0 }
0x1484   :  { %3147 = vadd.xlane.f32.xlu0 %v3146_v45  ;;  %v2973_v49 = vpop.permute.xlu1 %2972 }
0x1485   :  { %2977 = vst.msk [vmem:[#allocation2 + $0x8] sm:$0xff] %vm1313_vm4, %v2973_v49 }
0x1486   :  { %v4217_v27 = vpop.eup %4216 }
0x1487   :  { %v3149_v50 = vsel %vm305_vm2, %v4217_v27, 0.0 }
0x1488   :  { %3150 = vadd.xlane.f32.xlu0 %v3149_v50 }
0x149e   :  { %3156 = vrot.lane.b32.xlu0 %v4821_v28, %s4382_s25 }
0x14a2   :  { %2970 = vrot.lane.b32.xlu0 %v2888_v8, %s4383_s26  ;;  %v123_v8 = vld [vmem:[#allocation11 + $0x18] sm:$0xff] }
0x14a3   :  { %4101 = vmatprep.subr.mxu1 %v123_v8 }
0x150d   :  { %v3148_v51 = vpop.xlane.xlu0 %3147 }
0x150e   :  { %4218 = vrcp.f32 %v3148_v51 }
0x1511   :  { %v3151_v52 = vpop.xlane.xlu0 %3150 }
0x1512   :  { %4220 = vrcp.f32 %v3151_v52 }
0x1515   :  { %v3157_v20 = vpop.permute.xlu0 %3156 }
0x1516   :  { %4081 = vmatpush3.msra.mxu0 %v3157_v20 }
0x1517   :  { %4090 = vmatprep.subr.mxu0 %v4742_v0 }
0x1519   :  { %v2971_v53 = vpop.permute.xlu0 %2970 }
0x151a   :  { %2976 = vst.msk [vmem:[#allocation2] sm:$0xff] %vm1313_vm4, %v2971_v53 }
0x151b   :  { %v4219_v46 = vpop.eup %4218 }
0x151c   :  { %v3154_v48 = vmul.f32 %v4219_v46, %v4215_v43 }
0x151e   :  { %4083 = vmatmul.mubr.msk.f32.vlgmr.msra.gmra.mxu0 %vm305_vm2, %v3154_v48  ;;  %v127_v48 = vld [vmem:[%s5066_s7 + $0x18] sm:$0xff] }
0x151f   :  { %v4221_v54 = vpop.eup %4220  ;;  %4091 = vmatpush3.msra.mxu0 %v4742_v0 }
0x1520   :  { %v3155_v28 = vmul.f32 %v4221_v54, %v4217_v27  ;;  %4092 = vmatprep.subr.mxu0 %v4747_v1  ;;  %v126_v54 = vld [vmem:[%s5066_s7 + $0x10] sm:$0xff] }
0x1521   :  { %4093 = vmatpush3.msra.mxu0 %v4747_v1 }
0x1522   :  { %4088 = vmatmul.mubr.msk.f32.vlgmr.msra.gmra.mxu1 %vm305_vm2, %v3155_v28  ;;  %4094 = vmatprep.subr.mxu0 %v4754_v3  ;;  %v125_v28 = vld [vmem:[%s5066_s7 + $0x8] sm:$0xff] }
0x1523   :  { %4095 = vmatpush3.msra.mxu0 %v4754_v3  ;;  %4102 = vmatpush3.msra.mxu1 %v123_v8 }
0x1524   :  { %4096 = vmatprep.subr.mxu0 %v4761_v4 }
0x1525   :  { %4097 = vmatpush3.msra.mxu0 %v4761_v4 }
0x1526   :  { %4112 = vmatprep.subr.mxu0 %v131_v33 }
0x15de   :  { %v3228_v55 = vpop.f32.mrf.mxu0 }
0x15df   :  { %3310 = vrot.lane.b32.xlu0 %v3228_v55, %s4384_s14  ;;  %v124_v55 = vld [vmem:[%s5066_s7] sm:$0xff] }
0x15e0   :  { %v4084_v56 = vpop.f32.mrf.mxu0 }
0x15e1   :  { %v3754_v56 = vld [vmem:[%s5069_s10] ss:$0 sm:$0xff] }
0x15e2   :  { %v3304_v0 = vpop.f32.mrf.mxu1 }
0x15e3   :  { %3312 = vrot.lane.b32.xlu1 %v3304_v0, %s4384_s14 }
0x15e4   :  { %v4089_v57 = vpop.f32.mrf.mxu1 }
0x1651   :  { %v3311_v58 = vpop.permute.xlu0 %3310 }
0x1652   :  { %3316 = vst.msk [vmem:[#allocation2] sm:$0xff] %vm1654_vm5, %v3311_v58 }
0x1655   :  { %v3313_v1 = vpop.permute.xlu1 %3312 }
0x1656   :  { %3317 = vst.msk [vmem:[#allocation2 + $0x8] sm:$0xff] %vm1654_vm5, %v3313_v1 }
0x1659   :  { %v3318_v59 = vld [vmem:[#allocation2] sm:$0xff] }
0x165a   :  { %4098 = vmatprep.mubr.msk.f32.mxu0 %vm142_vm0, %v3318_v59 }
0x165d   :  { %v3319_v3 = vld [vmem:[#allocation2 + $0x8] sm:$0xff] }
0x165e   :  { %4099 = vmatmul.mubr.msk.f32.vlgmr.msra.gmra.mxu0 %vm142_vm0, %v3319_v3 }
0x165f   :  { %4113 = vmatpush3.msra.mxu0 %v131_v33 }
0x1660   :  { %4114 = vmatprep.subr.mxu0 %v130_v34 }
0x1661   :  { %4115 = vmatpush3.msra.mxu0 %v130_v34 }
0x1662   :  { %4116 = vmatprep.subr.mxu0 %v129_v18 }
0x1663   :  { %4117 = vmatpush3.msra.mxu0 %v129_v18 }
0x1664   :  { %4118 = vmatprep.subr.mxu0 %v128_v35 }
0x1665   :  { %4119 = vmatpush3.msra.mxu0 %v128_v35 }
0x1666   :  { %4120 = vmatprep.subr.mxu0 %v127_v48 }
0x1667   :  { %4121 = vmatpush3.msra.mxu0 %v127_v48 }
0x1668   :  { %4122 = vmatprep.subr.mxu0 %v126_v54 }
0x1669   :  { %4123 = vmatpush3.msra.mxu0 %v126_v54 }
0x166a   :  { %4124 = vmatprep.subr.mxu0 %v125_v28 }
0x166b   :  { %4125 = vmatpush3.msra.mxu0 %v125_v28 }
0x166c   :  { %4126 = vmatprep.subr.mxu0 %v124_v55 }
0x166d   :  { %4127 = vmatpush3.msra.mxu0 %v124_v55 }
0x171e   :  { %v4100_v4 = vpop.f32.mrf.mxu0 }
0x171f   :  { %v3398_v60 = vadd.f32 %v4100_v4, %v4784_v29  ;;  %v3538_v4 = vsub.s32 4, %v4550_v12 }
0x1720   :  { %v3392_v61 = vpop.f32.mrf.mxu0 }
0x1721   :  { %v3393_v62 = vadd.f32 %v3392_v61, %v4784_v29  ;;  %v3402_v24 = vadd.f32 %v3398_v60, %v4814_v25  ;;  %v4238_v60 = vld [vmem:[%s5067_s8] sm:$0x1f]  ;;  %s4385_s8 = smov [#allocation12]  }
0x1722   :  { %v3539_v61 = vrot.slane %v4238_v60, %v3538_v4  ;;  %s3675_s10 = sshll.u32 %s4385_s8, 4  ;;  %s3676_s10 = int_to_ptr.vmem [resolvable:$true] %s3675_s10 }
0x1723   :  { %v3406_v13 = vsel %vm142_vm0, %v3402_v24, 0.0  ;;  %v3401_v22 = vadd.f32 %v3393_v62, %v4809_v19  ;;  %v122_v19 = vld [vmem:[#allocation11 + $0x10] sm:$0xff]  ;;  %s4339_s29 = scalar_lea.vmem %s3676_s10, 256  ;;  %p4344_p12 = scmp.lt.s32.totalorder %s3676_s10, %s3676_s10 }
0x1724   :  { %3407 = vadd.xlane.f32.xlu1 %v3406_v13  ;;  %4103 = vmatprep.subr.mxu1 %v122_v19  ;;  %p4340_p11 = scmp.ne.s32.totalorder %s3676_s10, %s4339_s29  ;;  %p4345_p13 = scmp.lt.s32.totalorder %s4339_s29, %s4339_s29 }
0x1725   :  { %v3403_v14 = vsel %vm142_vm0, %v3401_v22, 0.0  ;;  %4104 = vmatpush3.msra.mxu1 %v122_v19 }
0x1726   :  { %3404 = vadd.xlane.f32.xlu0 %v3403_v14  ;;  %4105 = vmatprep.subr.mxu1 %v121_v32  ;;  %p4346_p0 = por %p4345_p13, %p4344_p12 }
0x1727   :  { %4106 = vmatpush3.msra.mxu1 %v121_v32 }
0x1728   :  { %4107 = vmatprep.subr.mxu1 %v120_v9  ;;  %p4347_p1 = pnand %p4346_p0, %p4340_p11 }
0x1729   :  { %4108 = vmatpush3.msra.mxu1 %v120_v9 }
0x17ad   :  { %v3408_v16 = vpop.xlane.xlu1 %3407 }
0x17ae   :  { %v3410_v23 = vmul.f32 0.03125, %v3408_v16 }
0x17af   :  { %v3405_v21 = vpop.xlane.xlu0 %3404 }
0x17b0   :  { %v3409_v15 = vmul.f32 0.03125, %v3405_v21  ;;  %v3412_v26 = vsub.f32 %v3402_v24, %v3410_v23 }
0x17b2   :  { %v3411_v6 = vsub.f32 %v3401_v22, %v3409_v15  ;;  %v3414_v29 = vmul.f32 %v3412_v26, %v3412_v26  ;;  %v3442_v51 = vmul.f32 %v3412_v26, %v4801_v63 }
0x17b4   :  { %v3413_v31 = vmul.f32 %v3411_v6, %v3411_v6  ;;  %v3418_v25 = vsel %vm142_vm0, %v3414_v29, 0.0  ;;  %v3441_v49 = vmul.f32 %v3411_v6, %v4801_v63 }
0x17b6   :  { %v3415_v30 = vsel %vm142_vm0, %v3413_v31, 0.0 }
0x17b7   :  { %3416 = vadd.xlane.f32.xlu0 %v3415_v30 }
0x17bb   :  { %3419 = vadd.xlane.f32.xlu0 %v3418_v25 }
0x1840   :  { %v3417_v36 = vpop.xlane.xlu0 %3416 }
0x1841   :  { %v3421_v37 = vmul.f32 0.032258064, %v3417_v36 }
0x1843   :  { %4222 = vrsqrt.f32 %v3421_v37  ;;  %vm3425_vm10 = vcmp.eq.f32.partialorder %v3421_v37, inf  ;;  %v3428_v41 = vand.u32 2147483648, %v3421_v37  ;;  %vm3427_vm11 = vcmp.eq.f32.partialorder %v3421_v37, 0.0 }
0x1844   :  { %v3420_v38 = vpop.xlane.xlu0 %3419 }
0x1845   :  { %v3422_v39 = vmul.f32 0.032258064, %v3420_v38 }
0x1847   :  { %4224 = vrsqrt.f32 %v3422_v39  ;;  %vm3432_vm12 = vcmp.eq.f32.partialorder %v3422_v39, inf  ;;  %v3435_v47 = vand.u32 2147483648, %v3422_v39  ;;  %vm3434_vm13 = vcmp.eq.f32.partialorder %v3422_v39, 0.0 }
0x1850   :  { %v4223_v40 = vpop.eup %4222 }
0x1851   :  { %v3424_v10 = vmul.f32 %v4223_v40, %v3421_v37 }
0x1853   :  { %v3426_v5 = vsel %vm3425_vm10, %v3421_v37, %v3424_v10 }
0x1854   :  { %v4225_v42 = vpop.eup %4224  ;;  %v3429_v17 = vsel %vm3427_vm11, %v3428_v41, %v3426_v5 }
0x1855   :  { %v3437_v2 = vadd.f32 1e-06, %v3429_v17  ;;  %v3431_v44 = vmul.f32 %v4225_v42, %v3422_v39 }
0x1857   :  { %4226 = vrcp.f32 %v3437_v2  ;;  %v3433_v7 = vsel %vm3432_vm12, %v3422_v39, %v3431_v44 }
0x1858   :  { %v3436_v43 = vsel %vm3434_vm13, %v3435_v47, %v3433_v7 }
0x1859   :  { %v3438_v45 = vadd.f32 1e-06, %v3436_v43 }
0x185b   :  { %4228 = vrcp.f32 %v3438_v45 }
0x1864   :  { %v4227_v27 = vpop.eup %4226 }
0x1865   :  { %v3443_v50 = vmul.f32 %v4227_v27, %v3441_v49 }
0x1867   :  { %v3445_v52 = vadd.f32 %v3443_v50, %v4804_v11 }
0x1868   :  { %v4229_v20 = vpop.eup %4228 }
0x1869   :  { %4109 = vmatprep.mubr.msk.f32.mxu1 %vm142_vm0, %v3445_v52  ;;  %v3444_v53 = vmul.f32 %v4229_v20, %v3442_v51 }
0x186b   :  { %v3446_v46 = vadd.f32 %v3444_v53, %v4804_v11 }
0x186d   :  { %4110 = vmatmul.mubr.msk.f32.vlgmr.msra.gmra.mxu1 %vm142_vm0, %v3446_v46 }
0x192d   :  { %v4111_v0 = vpop.f32.mrf.mxu1 }
0x192e   :  { %v3531_v57 = vadd.f32 %v4111_v0, %v3754_v56 }
0x192f   :  { %v3525_v58 = vpop.f32.mrf.mxu1 }
0x1930   :  { %v3526_v1 = vadd.f32 %v3754_v56, %v3525_v58  ;;  %v3535_v3 = vmax.f32 %v3531_v57, 0.0 }
0x1932   :  { %v3534_v59 = vmax.f32 %v3526_v1, 0.0 }
0x1934   :  { %4128 = vmatprep.mubr.msk.f32.mxu0 %vm3540_vm14, %v3534_v59 }
0x1935   :  { %4129 = vmatmul.mubr.msk.f32.vlgmr.msra.gmra.mxu0 %vm3540_vm14, %v3535_v3 }
0x19f5   :  { %v4130_v62 = vpop.f32.mrf.mxu0 }
0x19f6   :  { %v3619_v24 = vadd.f32 %v4130_v62, %v3539_v61 }
0x19f7   :  { %v3613_v13 = vpop.f32.mrf.mxu0 }
0x19f8   :  { %v3614_v22 = vadd.f32 %v3613_v13, %v3539_v61  ;;  %v3623_v14 = vadd.f32 %v3619_v24, %v3446_v46 }
0x19fa   :  { %v3627_v16 = vsel %vm142_vm0, %v3623_v14, 0.0  ;;  %v3622_v23 = vadd.f32 %v3614_v22, %v3445_v52 }
0x19fb   :  { %3628 = vadd.xlane.f32.xlu1 %v3627_v16 }
0x19fc   :  { %v3624_v21 = vsel %vm142_vm0, %v3622_v23, 0.0 }
0x19fd   :  { %3625 = vadd.xlane.f32.xlu0 %v3624_v21 }
0x1a84   :  { %v3629_v15 = vpop.xlane.xlu1 %3628 }
0x1a85   :  { %v3631_v26 = vmul.f32 0.03125, %v3629_v15 }
0x1a86   :  { %v3626_v12 = vpop.xlane.xlu0 %3625 }
0x1a87   :  { %v3633_v6 = vsub.f32 %v3623_v14, %v3631_v26  ;;  %v3630_v31 = vmul.f32 0.03125, %v3626_v12 }
0x1a89   :  { %v3632_v30 = vsub.f32 %v3622_v23, %v3630_v31  ;;  %v3635_v29 = vmul.f32 %v3633_v6, %v3633_v6  ;;  %v3663_v2 = vmul.f32 %v3633_v6, %v4801_v63 }
0x1a8b   :  { %v3639_v25 = vsel %vm142_vm0, %v3635_v29, 0.0  ;;  %v3634_v8 = vmul.f32 %v3632_v30, %v3632_v30  ;;  %v3662_v7 = vmul.f32 %v3632_v30, %v4801_v63 }
0x1a8c   :  { %3640 = vadd.xlane.f32.xlu1 %v3639_v25 }
0x1a8d   :  { %v3636_v19 = vsel %vm142_vm0, %v3634_v8, 0.0 }
0x1a8e   :  { %3637 = vadd.xlane.f32.xlu0 %v3636_v19 }
0x1b15   :  { %v3641_v32 = vpop.xlane.xlu1 %3640 }
0x1b16   :  { %v3643_v9 = vmul.f32 0.032258064, %v3641_v32 }
0x1b17   :  { %v3638_v33 = vpop.xlane.xlu0 %3637 }
0x1b18   :  { %4230 = vrsqrt.f32 %v3643_v9  ;;  %v3642_v34 = vmul.f32 0.032258064, %v3638_v33  ;;  %vm3653_vm15 = vcmp.eq.f32.partialorder %v3643_v9, inf  ;;  %v3656_v36 = vand.u32 2147483648, %v3643_v9 }
0x1b19   :  { %vm3655_vm1 = vcmp.eq.f32.partialorder %v3643_v9, 0.0 }
0x1b1a   :  { %4232 = vrsqrt.f32 %v3642_v34  ;;  %vm3646_vm2 = vcmp.eq.f32.partialorder %v3642_v34, inf  ;;  %v3649_v41 = vand.u32 2147483648, %v3642_v34  ;;  %vm3648_vm3 = vcmp.eq.f32.partialorder %v3642_v34, 0.0 }
0x1b25   :  { %v4231_v18 = vpop.eup %4230 }
0x1b26   :  { %v3652_v35 = vmul.f32 %v4231_v18, %v3643_v9 }
0x1b27   :  { %v4233_v37 = vpop.eup %4232 }
0x1b28   :  { %v3654_v38 = vsel %vm3653_vm15, %v3643_v9, %v3652_v35  ;;  %v3645_v40 = vmul.f32 %v4233_v37, %v3642_v34 }
0x1b29   :  { %v3657_v39 = vsel %vm3655_vm1, %v3656_v36, %v3654_v38 }
0x1b2a   :  { %v3659_v10 = vadd.f32 1e-06, %v3657_v39  ;;  %v3647_v5 = vsel %vm3646_vm2, %v3642_v34, %v3645_v40 }
0x1b2b   :  { %v3650_v42 = vsel %vm3648_vm3, %v3649_v41, %v3647_v5 }
0x1b2c   :  { %4234 = vrcp.f32 %v3659_v10  ;;  %v3658_v17 = vadd.f32 1e-06, %v3650_v42 }
0x1b2e   :  { %4236 = vrcp.f32 %v3658_v17 }
0x1b39   :  { %v4235_v44 = vpop.eup %4234 }
0x1b3a   :  { %v3665_v47 = vmul.f32 %v4235_v44, %v3663_v2 }
0x1b3b   :  { %v4237_v43 = vpop.eup %4236 }
0x1b3c   :  { %v3667_v45 = vadd.f32 %v3665_v47, %v4804_v11  ;;  %v3664_v49 = vmul.f32 %v4237_v43, %v3662_v7 }
0x1b3e   :  { %3669 = vst.msk [vmem:[#allocation12 + $0x8] sm:$0xff] %vm142_vm0, %v3667_v45  ;;  %v3666_v27 = vadd.f32 %v3664_v49, %v4804_v11 }
0x1b40   :  { %3668 = vst.msk [vmem:[#allocation12] sm:$0xff] %vm142_vm0, %v3666_v27 }
0x1b41   :  { %4350 = shalt.err (!%p4347_p1)
}
0x1b42   :  { %3681 = dma.vmem_to_hbm [thread:$0]  %s3676_s10, 256, %s5070_s11, [#allocation5], %s4369_s22, %s4369_s22, %s4370_s23  }
0x1b43   :  { %4365 = dma.done.wait [#allocation5], 256  }
0x1b44   :  { %4366 = vsyncadd [#allocation5], 4294967040 }
0x1b45   :  { %3685 = vsyncpa [#allocation4], 1 }
0x1b46   :  { %3686 = vsyncpa [#allocation7], 1 }
0x1b47   :  { %3687 = vsyncpa [#allocation10], 1 }
0x1b48   :  { %3688 = vsyncpa [#allocation5], 1 }

</bundles_post_ra>
